<compile_context>
chip_gen: v6e
topology: v6e:2x2x1
jax: 0.10.0
libtpu: 0.0.40
codegen_flags: <defaults>
</compile_context>

<pallas_src>
import jax
import jax.numpy as jnp
from jax.experimental import pallas as pl
from jax.experimental.pallas import tpu as pltpu


LANES = 128


def _ceil_to(n, m):
    return ((n + m - 1) // m) * m


def pack_params(p):
    """Pack all weights/biases into one (rows, 128) f32 array.

    Each tensor starts at a row offset that is a multiple of 8 (sublane tile)
    and column 0, so in-kernel static slices stay tile-friendly.
    Returns (packed_array, offsets) with offsets[name] = (row0, rows, cols).
    """
    order = [
        ("wl1", p["wl1"]), ("wr1", p["wr1"]), ("bl1", p["bl1"]),
        ("wl2", p["wl2"]), ("wr2", p["wr2"]), ("bl2", p["bl2"]),
        ("wfc", p["wfc"]), ("bfc", p["bfc"]),
        ("w1", p["w1"]), ("b1", p["b1"]),
        ("w2", p["w2"]), ("b2", p["b2"]),
        ("w3", p["w3"]), ("b3", p["b3"]),
    ]
    blocks, offs, row = [], {}, 0
    for name, t in order:
        r, c = int(t.shape[0]), int(t.shape[1])
        assert c <= LANES
        offs[name] = (row, r, c)
        rpad = _ceil_to(r, 8)
        blk = jnp.zeros((rpad, LANES), jnp.float32).at[:r, :c].set(
            t.astype(jnp.float32))
        blocks.append(blk)
        row += rpad
    packed = jnp.concatenate(blocks, axis=0)
    return packed, offs


def _block_diag_groups(m, bt):
    """(B, r, c) -> (B//bt, bt*r, bt*c): per-group block-diagonal embedding."""
    b, r, c = m.shape
    s = b // bt
    m = m.reshape(s, bt, r, c)
    eye = jnp.eye(bt, dtype=m.dtype)
    out = jnp.einsum("sbrc,bk->sbrkc", m, eye)   # zero off-diagonal blocks
    return out.reshape(s, bt * r, bt * c)


def make_lesets_kernel(offs):
    def kernel(x_ref, a_ref, pool_ref, frac_ref, w_ref, out_ref):
        f32 = jnp.float32

        x = x_ref[...]        # (Bt*N, F)
        a = a_ref[...]        # (Bt*N, Bt*N)  block-diag mean aggregation
        pool = pool_ref[...]  # (Bt*G, Bt*N)  block-diag global_mean_pool
        frac = frac_ref[...]  # (Rp, Bt*G)    block-diag fractions (rows>=Bt zero)

        def w(name):
            r0, r, c = offs[name]
            return w_ref[r0:r0 + r, 0:c]   # static slice -> cheap view/load

        # --- SAGEConv 1 (F -> D): lin_l(mean_j x_j) + lin_r(x_i), ReLU ---
        aggr = jnp.dot(a, x, preferred_element_type=f32)           # (Bt*N, F)
        h = (jnp.dot(aggr, w("wl1"), preferred_element_type=f32)
             + jnp.dot(x, w("wr1"), preferred_element_type=f32)
             + w("bl1"))
        h = jnp.maximum(h, 0.0)                                    # (Bt*N, D)

        # --- SAGEConv 2 (D -> D), ReLU ---
        aggr = jnp.dot(a, h, preferred_element_type=f32)           # (Bt*N, D)
        h = (jnp.dot(aggr, w("wl2"), preferred_element_type=f32)
             + jnp.dot(h, w("wr2"), preferred_element_type=f32)
             + w("bl2"))
        h = jnp.maximum(h, 0.0)                                    # (Bt*N, D)

        # --- global_mean_pool + fc + tanh (after_readout='tanh') ---
        pooled = jnp.dot(pool, h, preferred_element_type=f32)      # (Bt*G, D)
        emb = jnp.tanh(jnp.dot(pooled, w("wfc"),
                               preferred_element_type=f32) + w("bfc"))

        # --- LESets: per-material frac @ embeddings, then rho MLP ---
        v = jnp.dot(frac, emb, preferred_element_type=f32)         # (Rp, D)
        z = jnp.maximum(
            jnp.dot(v, w("w1"), preferred_element_type=f32) + w("b1"), 0.0)
        z = jnp.maximum(
            jnp.dot(z, w("w2"), preferred_element_type=f32) + w("b2"), 0.0)
        y = jnp.dot(z, w("w3"), preferred_element_type=f32) + w("b3")  # (Rp,1)

        # One lane-dense, unmasked (Rp, 128) store per step; material b of the
        # step lives on sublane b (rows >= Bt hold discarded padding values).
        out_ref[...] = jnp.broadcast_to(y, (y.shape[0], LANES))

    return kernel


def lesets_forward(x, a_mean, pool, frac, packed, offs, bt):
    """Batched forward: B materials total, bt materials per grid step.

    x:      (B, N, F)   node features
    a_mean: (B, N, N)   mean-aggregation matrices (SAGEConv aggr='mean')
    pool:   (B, G, N)   global_mean_pool matrices
    frac:   (B, 1, G)   phase fractions (graph_list.y.unsqueeze(0))
    packed: (R, 128)    packed parameters
    Returns (B,) rho outputs (one scalar per material).
    """
    B, N, F = x.shape
    G = pool.shape[1]
    assert B % bt == 0, "batch must be divisible by materials-per-step"
    S = B // bt                     # grid steps (2 -> one per v7x TensorCore)
    BtN, BtG = bt * N, bt * G
    Rp = _ceil_to(bt, 8)            # output / frac rows, sublane-padded
    PR, PL = packed.shape

    # Host-side restructuring: fold bt materials into one matmul M dimension.
    x_g = x.reshape(S, BtN, F)
    a_g = _block_diag_groups(a_mean, bt)            # (S, BtN, BtN)
    pool_g = _block_diag_groups(pool, bt)           # (S, BtG, BtN)
    frac_g = _block_diag_groups(frac, bt)           # (S, bt,  BtG)
    if Rp > bt:
        frac_g = jnp.pad(frac_g, ((0, 0), (0, Rp - bt), (0, 0)))

    kernel = make_lesets_kernel(offs)
    out = pl.pallas_call(
        kernel,
        out_shape=jax.ShapeDtypeStruct((S, Rp, LANES), jnp.float32),
        grid_spec=pltpu.PrefetchScalarGridSpec(
            num_scalar_prefetch=0,
            grid=(S,),
            in_specs=[
                pl.BlockSpec((None, BtN, F), lambda s: (s, 0, 0)),
                pl.BlockSpec((None, BtN, BtN), lambda s: (s, 0, 0)),
                pl.BlockSpec((None, BtG, BtN), lambda s: (s, 0, 0)),
                pl.BlockSpec((None, Rp, BtG), lambda s: (s, 0, 0)),
                # Packed weights: constant block index -> DMA'd once per call.
                pl.BlockSpec((PR, PL), lambda s: (0, 0)),
            ],
            out_specs=pl.BlockSpec((None, Rp, LANES), lambda s: (s, 0, 0)),
        ),
        compiler_params=pltpu.CompilerParams(
            dimension_semantics=("parallel",)),     # 2 steps -> 2 v7x TCs
    )(x_g, a_g, pool_g, frac_g, packed)
    return out[:, :bt, 0].reshape(B)


def lesets_reference(x, a_mean, pool, frac, p):
    def one(xb, ab, pb, fb):
        h = jnp.maximum(ab @ xb @ p["wl1"] + p["bl1"] + xb @ p["wr1"], 0.0)
        h = jnp.maximum(ab @ h @ p["wl2"] + p["bl2"] + h @ p["wr2"], 0.0)
        emb = jnp.tanh(pb @ h @ p["wfc"] + p["bfc"])
        v = fb @ emb
        z = jnp.maximum(v @ p["w1"] + p["b1"], 0.0)
        z = jnp.maximum(z @ p["w2"] + p["b2"], 0.0)
        return (z @ p["w3"] + p["b3"]).reshape(())
    return jax.vmap(one)(x, a_mean, pool, frac)


if __name__ == "__main__":
    # B materials, each with G graphs (phases) of 8 nodes; gnn_dim=32,
    # lesets_dim=16.  Bt=8 materials per grid step -> M = Bt*N = 256 per
    # matmul, grid=(2,) so both v7x TensorCores get one step each.
    B = 16
    BT = 8
    G, NODES_PER_GRAPH = 4, 8
    N = G * NODES_PER_GRAPH    # 32 nodes per material
    F = 8                      # n_node_features
    D = 32                     # gnn_dim (== emb_dim since conv != 'CGConv')
    L = 16                     # lesets_dim

    key = jax.random.PRNGKey(0)
    keys = jax.random.split(key, 18)

    # Node features per material.
    x = jax.random.normal(keys[0], (B, N, F), dtype=jnp.float32)

    # Deterministic ring edges (both directions) inside each graph.
    src_list, dst_list = [], []
    for g in range(G):
        base = g * NODES_PER_GRAPH
        for i in range(NODES_PER_GRAPH):
            s, d = base + i, base + (i + 1) % NODES_PER_GRAPH
            src_list += [s, d]
            dst_list += [d, s]
    src = jnp.array(src_list, dtype=jnp.int32)
    dst = jnp.array(dst_list, dtype=jnp.int32)

    # Dense mean-aggregation matrix: A_mean[i, j] = 1/in_deg(i) if edge j->i.
    adj = jnp.zeros((N, N), dtype=jnp.float32).at[dst, src].add(1.0)
    deg = jnp.clip(adj.sum(axis=1, keepdims=True), 1.0, None)
    a_single = adj / deg
    a_mean = jnp.tile(a_single[None], (B, 1, 1))                      # (B, N, N)

    # global_mean_pool matrix (G, N), same topology for every material.
    batch = jnp.repeat(jnp.arange(G), NODES_PER_GRAPH)
    pool_single = (jnp.arange(G)[:, None] == batch[None, :]).astype(jnp.float32)
    pool_single = pool_single / pool_single.sum(axis=1, keepdims=True)
    pool = jnp.tile(pool_single[None], (B, 1, 1))                     # (B, G, N)

    # graph_list.y -> fractions, frac = y.unsqueeze(0): (1, G) per material.
    frac = jax.nn.softmax(
        jax.random.normal(keys[1], (B, G), dtype=jnp.float32), axis=-1)
    frac = frac.reshape(B, 1, G)

    def lin(k, fan_in, fan_out):
        return 0.1 * jax.random.normal(k, (fan_in, fan_out), dtype=jnp.float32)

    params = {
        # SAGEConv layer 1 (F -> D): lin_l (bias) on aggregated, lin_r (no bias).
        "wl1": lin(keys[2], F, D),
        "wr1": lin(keys[3], F, D),
        "bl1": 0.1 * jax.random.normal(keys[4], (1, D), dtype=jnp.float32),
        # SAGEConv layer 2 (D -> D).
        "wl2": lin(keys[5], D, D),
        "wr2": lin(keys[6], D, D),
        "bl2": 0.1 * jax.random.normal(keys[7], (1, D), dtype=jnp.float32),
        # GraphEmbedding.fc (D -> D).
        "wfc": lin(keys[8], D, D),
        "bfc": 0.1 * jax.random.normal(keys[9], (1, D), dtype=jnp.float32),
        # rho MLP.
        "w1": lin(keys[10], D, L),
        "b1": 0.1 * jax.random.normal(keys[11], (1, L), dtype=jnp.float32),
        "w2": lin(keys[12], L, L),
        "b2": 0.1 * jax.random.normal(keys[13], (1, L), dtype=jnp.float32),
        "w3": lin(keys[14], L, 1),
        "b3": 0.1 * jax.random.normal(keys[15], (1, 1), dtype=jnp.float32),
    }

    packed, offs = pack_params(params)

    out = lesets_forward(x, a_mean, pool, frac, packed, offs, bt=BT)
    out = jax.block_until_ready(out)

    ref = lesets_reference(x, a_mean, pool, frac, params)
    assert out.shape == (B,)
    assert jnp.allclose(out, ref, atol=1e-4, rtol=1e-4), (out, ref)

    print("KERNEL_OK")
</pallas_src>

<mosaic_0001>
module attributes {stable_mosaic.version = 11 : i64} {
  func.func @kernel(%arg0: i32, %arg1: memref<1x256x8xf32, #tpu.memory_space<vmem>>, %arg2: memref<1x256x256xf32, #tpu.memory_space<vmem>>, %arg3: memref<1x32x256xf32, #tpu.memory_space<vmem>>, %arg4: memref<1x8x32xf32, #tpu.memory_space<vmem>>, %arg5: memref<224x128xf32, #tpu.memory_space<vmem>>, %arg6: memref<1x8x128xf32, #tpu.memory_space<vmem>>) attributes {dimension_semantics = [#tpu.dimension_semantics<parallel>], iteration_bounds = array<i64: 2>, scalar_prefetch = 0 : i64, scratch_operands = 0 : i64, tpu.core_type = #tpu.core_type<tc>, window_params = [{transform_indices = @transform_0, window_bounds = array<i64: 1, 256, 8>}, {transform_indices = @transform_1, window_bounds = array<i64: 1, 256, 256>}, {transform_indices = @transform_2, window_bounds = array<i64: 1, 32, 256>}, {transform_indices = @transform_3, window_bounds = array<i64: 1, 8, 32>}, {pipeline_mode = #tpu.pipeline_mode<synchronous>, transform_indices = @transform_4, window_bounds = array<i64: 224, 128>}, {transform_indices = @transform_5, window_bounds = array<i64: 1, 8, 128>}]} {
    %c0 = arith.constant 0 : index
    %c0_0 = arith.constant 0 : index
    %c0_1 = arith.constant 0 : index
    %0 = vector.load %arg1[%c0, %c0_0, %c0_1] : memref<1x256x8xf32, #tpu.memory_space<vmem>>, vector<1x256x8xf32>
    %1 = vector.shape_cast %0 : vector<1x256x8xf32> to vector<256x8xf32>
    %c0_2 = arith.constant 0 : index
    %c0_3 = arith.constant 0 : index
    %c0_4 = arith.constant 0 : index
    %2 = vector.load %arg2[%c0_2, %c0_3, %c0_4] : memref<1x256x256xf32, #tpu.memory_space<vmem>>, vector<1x256x256xf32>
    %3 = vector.shape_cast %2 : vector<1x256x256xf32> to vector<256x256xf32>
    %c0_5 = arith.constant 0 : index
    %c0_6 = arith.constant 0 : index
    %c0_7 = arith.constant 0 : index
    %4 = vector.load %arg3[%c0_5, %c0_6, %c0_7] : memref<1x32x256xf32, #tpu.memory_space<vmem>>, vector<1x32x256xf32>
    %5 = vector.shape_cast %4 : vector<1x32x256xf32> to vector<32x256xf32>
    %c0_8 = arith.constant 0 : index
    %c0_9 = arith.constant 0 : index
    %c0_10 = arith.constant 0 : index
    %6 = vector.load %arg4[%c0_8, %c0_9, %c0_10] : memref<1x8x32xf32, #tpu.memory_space<vmem>>, vector<1x8x32xf32>
    %7 = vector.shape_cast %6 : vector<1x8x32xf32> to vector<8x32xf32>
    %cst = arith.constant dense<0.000000e+00> : vector<256x8xf32>
    %8 = tpu.matmul %3, %1, %cst {dimension_numbers = #tpu.dot_dimension_numbers<[1], [0], [0], [1], [0, 0, 1, 1], [], []>} : vector<256x256xf32>, vector<256x8xf32>, vector<256x8xf32> -> vector<256x8xf32>
    %c0_11 = arith.constant 0 : index
    %c0_12 = arith.constant 0 : index
    %9 = vector.load %arg5[%c0_11, %c0_12] : memref<224x128xf32, #tpu.memory_space<vmem>>, vector<8x32xf32>
    %cst_13 = arith.constant dense<0.000000e+00> : vector<256x32xf32>
    %10 = tpu.matmul %8, %9, %cst_13 {dimension_numbers = #tpu.dot_dimension_numbers<[1], [0], [0], [1], [0, 0, 1, 1], [], []>} : vector<256x8xf32>, vector<8x32xf32>, vector<256x32xf32> -> vector<256x32xf32>
    %c8 = arith.constant 8 : index
    %c0_14 = arith.constant 0 : index
    %11 = vector.load %arg5[%c8, %c0_14] : memref<224x128xf32, #tpu.memory_space<vmem>>, vector<8x32xf32>
    %cst_15 = arith.constant dense<0.000000e+00> : vector<256x32xf32>
    %12 = tpu.matmul %1, %11, %cst_15 {dimension_numbers = #tpu.dot_dimension_numbers<[1], [0], [0], [1], [0, 0, 1, 1], [], []>} : vector<256x8xf32>, vector<8x32xf32>, vector<256x32xf32> -> vector<256x32xf32>
    %13 = arith.addf %10, %12 : vector<256x32xf32>
    %c16 = arith.constant 16 : index
    %c0_16 = arith.constant 0 : index
    %14 = vector.load %arg5[%c16, %c0_16] : memref<224x128xf32, #tpu.memory_space<vmem>>, vector<1x32xf32>
    %15 = vector.broadcast %14 : vector<1x32xf32> to vector<256x32xf32>
    %16 = arith.addf %13, %15 : vector<256x32xf32>
    %cst_17 = arith.constant 0.000000e+00 : f32
    %17 = vector.broadcast %cst_17 : f32 to vector<256x32xf32>
    %18 = arith.maximumf %16, %17 : vector<256x32xf32>
    %cst_18 = arith.constant dense<0.000000e+00> : vector<256x32xf32>
    %19 = tpu.matmul %3, %18, %cst_18 {dimension_numbers = #tpu.dot_dimension_numbers<[1], [0], [0], [1], [0, 0, 1, 1], [], []>} : vector<256x256xf32>, vector<256x32xf32>, vector<256x32xf32> -> vector<256x32xf32>
    %c24 = arith.constant 24 : index
    %c0_19 = arith.constant 0 : index
    %20 = vector.load %arg5[%c24, %c0_19] : memref<224x128xf32, #tpu.memory_space<vmem>>, vector<32x32xf32>
    %cst_20 = arith.constant dense<0.000000e+00> : vector<256x32xf32>
    %21 = tpu.matmul %19, %20, %cst_20 {dimension_numbers = #tpu.dot_dimension_numbers<[1], [0], [0], [1], [0, 0, 1, 1], [], []>} : vector<256x32xf32>, vector<32x32xf32>, vector<256x32xf32> -> vector<256x32xf32>
    %c56 = arith.constant 56 : index
    %c0_21 = arith.constant 0 : index
    %22 = vector.load %arg5[%c56, %c0_21] : memref<224x128xf32, #tpu.memory_space<vmem>>, vector<32x32xf32>
    %cst_22 = arith.constant dense<0.000000e+00> : vector<256x32xf32>
    %23 = tpu.matmul %18, %22, %cst_22 {dimension_numbers = #tpu.dot_dimension_numbers<[1], [0], [0], [1], [0, 0, 1, 1], [], []>} : vector<256x32xf32>, vector<32x32xf32>, vector<256x32xf32> -> vector<256x32xf32>
    %24 = arith.addf %21, %23 : vector<256x32xf32>
    %c88 = arith.constant 88 : index
    %c0_23 = arith.constant 0 : index
    %25 = vector.load %arg5[%c88, %c0_23] : memref<224x128xf32, #tpu.memory_space<vmem>>, vector<1x32xf32>
    %26 = vector.broadcast %25 : vector<1x32xf32> to vector<256x32xf32>
    %27 = arith.addf %24, %26 : vector<256x32xf32>
    %cst_24 = arith.constant 0.000000e+00 : f32
    %28 = vector.broadcast %cst_24 : f32 to vector<256x32xf32>
    %29 = arith.maximumf %27, %28 : vector<256x32xf32>
    %cst_25 = arith.constant dense<0.000000e+00> : vector<32x32xf32>
    %30 = tpu.matmul %5, %29, %cst_25 {dimension_numbers = #tpu.dot_dimension_numbers<[1], [0], [0], [1], [0, 0, 1, 1], [], []>} : vector<32x256xf32>, vector<256x32xf32>, vector<32x32xf32> -> vector<32x32xf32>
    %c96 = arith.constant 96 : index
    %c0_26 = arith.constant 0 : index
    %31 = vector.load %arg5[%c96, %c0_26] : memref<224x128xf32, #tpu.memory_space<vmem>>, vector<32x32xf32>
    %cst_27 = arith.constant dense<0.000000e+00> : vector<32x32xf32>
    %32 = tpu.matmul %30, %31, %cst_27 {dimension_numbers = #tpu.dot_dimension_numbers<[1], [0], [0], [1], [0, 0, 1, 1], [], []>} : vector<32x32xf32>, vector<32x32xf32>, vector<32x32xf32> -> vector<32x32xf32>
    %c128 = arith.constant 128 : index
    %c0_28 = arith.constant 0 : index
    %33 = vector.load %arg5[%c128, %c0_28] : memref<224x128xf32, #tpu.memory_space<vmem>>, vector<1x32xf32>
    %34 = vector.broadcast %33 : vector<1x32xf32> to vector<32x32xf32>
    %35 = arith.addf %32, %34 : vector<32x32xf32>
    %36 = math.tanh %35 : vector<32x32xf32>
    %cst_29 = arith.constant dense<0.000000e+00> : vector<8x32xf32>
    %37 = tpu.matmul %7, %36, %cst_29 {dimension_numbers = #tpu.dot_dimension_numbers<[1], [0], [0], [1], [0, 0, 1, 1], [], []>} : vector<8x32xf32>, vector<32x32xf32>, vector<8x32xf32> -> vector<8x32xf32>
    %c136 = arith.constant 136 : index
    %c0_30 = arith.constant 0 : index
    %38 = vector.load %arg5[%c136, %c0_30] : memref<224x128xf32, #tpu.memory_space<vmem>>, vector<32x16xf32>
    %cst_31 = arith.constant dense<0.000000e+00> : vector<8x16xf32>
    %39 = tpu.matmul %37, %38, %cst_31 {dimension_numbers = #tpu.dot_dimension_numbers<[1], [0], [0], [1], [0, 0, 1, 1], [], []>} : vector<8x32xf32>, vector<32x16xf32>, vector<8x16xf32> -> vector<8x16xf32>
    %c168 = arith.constant 168 : index
    %c0_32 = arith.constant 0 : index
    %40 = vector.load %arg5[%c168, %c0_32] : memref<224x128xf32, #tpu.memory_space<vmem>>, vector<1x16xf32>
    %41 = vector.broadcast %40 : vector<1x16xf32> to vector<8x16xf32>
    %42 = arith.addf %39, %41 : vector<8x16xf32>
    %cst_33 = arith.constant 0.000000e+00 : f32
    %43 = vector.broadcast %cst_33 : f32 to vector<8x16xf32>
    %44 = arith.maximumf %42, %43 : vector<8x16xf32>
    %c176 = arith.constant 176 : index
    %c0_34 = arith.constant 0 : index
    %45 = vector.load %arg5[%c176, %c0_34] : memref<224x128xf32, #tpu.memory_space<vmem>>, vector<16x16xf32>
    %cst_35 = arith.constant dense<0.000000e+00> : vector<8x16xf32>
    %46 = tpu.matmul %44, %45, %cst_35 {dimension_numbers = #tpu.dot_dimension_numbers<[1], [0], [0], [1], [0, 0, 1, 1], [], []>} : vector<8x16xf32>, vector<16x16xf32>, vector<8x16xf32> -> vector<8x16xf32>
    %c192 = arith.constant 192 : index
    %c0_36 = arith.constant 0 : index
    %47 = vector.load %arg5[%c192, %c0_36] : memref<224x128xf32, #tpu.memory_space<vmem>>, vector<1x16xf32>
    %48 = vector.broadcast %47 : vector<1x16xf32> to vector<8x16xf32>
    %49 = arith.addf %46, %48 : vector<8x16xf32>
    %cst_37 = arith.constant 0.000000e+00 : f32
    %50 = vector.broadcast %cst_37 : f32 to vector<8x16xf32>
    %51 = arith.maximumf %49, %50 : vector<8x16xf32>
    %c200 = arith.constant 200 : index
    %c0_38 = arith.constant 0 : index
    %52 = vector.load %arg5[%c200, %c0_38] : memref<224x128xf32, #tpu.memory_space<vmem>>, vector<16x1xf32>
    %cst_39 = arith.constant dense<0.000000e+00> : vector<8x1xf32>
    %53 = tpu.matmul %51, %52, %cst_39 {dimension_numbers = #tpu.dot_dimension_numbers<[1], [0], [0], [1], [0, 0, 1, 1], [], []>} : vector<8x16xf32>, vector<16x1xf32>, vector<8x1xf32> -> vector<8x1xf32>
    %c216 = arith.constant 216 : index
    %c0_40 = arith.constant 0 : index
    %54 = vector.load %arg5[%c216, %c0_40] : memref<224x128xf32, #tpu.memory_space<vmem>>, vector<1x1xf32>
    %55 = vector.broadcast %54 : vector<1x1xf32> to vector<8x1xf32>
    %56 = arith.addf %53, %55 : vector<8x1xf32>
    %57 = vector.shape_cast %56 : vector<8x1xf32> to vector<8x1xf32>
    %58 = vector.broadcast %57 : vector<8x1xf32> to vector<8x128xf32>
    %c0_41 = arith.constant 0 : index
    %c0_42 = arith.constant 0 : index
    %c0_43 = arith.constant 0 : index
    %59 = vector.load %arg6[%c0_41, %c0_42, %c0_43] : memref<1x8x128xf32, #tpu.memory_space<vmem>>, vector<1x8x128xf32>
    %60 = vector.shape_cast %59 : vector<1x8x128xf32> to vector<8x128xf32>
    %61 = vector.shape_cast %58 : vector<8x128xf32> to vector<1x8x128xf32>
    tpu.vector_store %arg6[%c0_41, %c0_42, %c0_43], %61 {strides = array<i32>} : memref<1x8x128xf32, #tpu.memory_space<vmem>>, vector<1x8x128xf32>,
    return
  }
  func.func @transform_0(%arg0: i32) -> (i32, i32, i32) {
    %c0_i32 = arith.constant 0 : i32
    %c0_i32_0 = arith.constant 0 : i32
    %c0_i32_1 = arith.constant 0 : i32
    return %arg0, %c0_i32, %c0_i32_0 : i32, i32, i32
  }
  func.func @transform_1(%arg0: i32) -> (i32, i32, i32) {
    %c0_i32 = arith.constant 0 : i32
    %c0_i32_0 = arith.constant 0 : i32
    %c0_i32_1 = arith.constant 0 : i32
    return %arg0, %c0_i32, %c0_i32_0 : i32, i32, i32
  }
  func.func @transform_2(%arg0: i32) -> (i32, i32, i32) {
    %c0_i32 = arith.constant 0 : i32
    %c0_i32_0 = arith.constant 0 : i32
    %c0_i32_1 = arith.constant 0 : i32
    return %arg0, %c0_i32, %c0_i32_0 : i32, i32, i32
  }
  func.func @transform_3(%arg0: i32) -> (i32, i32, i32) {
    %c0_i32 = arith.constant 0 : i32
    %c0_i32_0 = arith.constant 0 : i32
    %c0_i32_1 = arith.constant 0 : i32
    return %arg0, %c0_i32, %c0_i32_0 : i32, i32, i32
  }
  func.func @transform_4(%arg0: i32) -> (i32, i32) {
    %c0_i32 = arith.constant 0 : i32
    %c0_i32_0 = arith.constant 0 : i32
    %c0_i32_1 = arith.constant 0 : i32
    return %c0_i32, %c0_i32_0 : i32, i32
  }
  func.func @transform_5(%arg0: i32) -> (i32, i32, i32) {
    %c0_i32 = arith.constant 0 : i32
    %c0_i32_0 = arith.constant 0 : i32
    %c0_i32_1 = arith.constant 0 : i32
    return %arg0, %c0_i32, %c0_i32_0 : i32, i32, i32
  }
}

</mosaic_0001>

<bundles_post_ra>
// kernel: tpu_custom_call.1
= control target key start
LH: loop header
LB: loop body
LE: loop exit
PB: predicated region body
PF: predicated region fallthrough
CT: control target
= control target key end

     0   :  { %10 = vsyncpa [#allocation3], 0  ;;  %s5069_s0 = inlined_call_operand.vmem [shape: f32[2,256,8], index: 0, kind: input, shape index: {}]   ;;  %s5070_s1 = inlined_call_operand.hbm [shape: f32[2,256,256], index: 1, kind: input, shape index: {}]   ;;  %s5071_s2 = inlined_call_operand.vmem [shape: f32[2,32,256], index: 2, kind: input, shape index: {}]   ;;  %s5072_s3 = inlined_call_operand.vmem [shape: f32[2,8,32], index: 3, kind: input, shape index: {}]   ;;  %s5073_s4 = inlined_call_operand.vmem [shape: f32[224,128], index: 4, kind: input, shape index: {}]   ;;  %s5074_s5 = inlined_call_operand.hbm [shape: f32[2,8,128], index: 5, kind: output, shape index: {}]  }
   0x1   :  { %12 = vsyncpa [#allocation3 + $0x1], 0 }
   0x2   :  { %13 = vsyncpa [#allocation4], 0 }
   0x3   :  { %15 = vsyncpa [#allocation4 + $0x1], 0  ;;  %s3759_s18 = smov 0   ;;  %s3761_s19 = smov 0  }
   0x4   :  { %s3763_s20 = smov 0   ;;  %s3765_s21 = smov 0  }
   0x5 LB: > { %s3780_s22 = sadd.s32 4294967295, %s3720_s21   ;;  %s2928_s23 = sadd.s32 4294967294, %s3720_s21   ;;  %s3720_s21 = sphi %s3765_s21, %s5241_s21   ;;  %s3716_s20 = sphi %s3763_s20, %s5240_s20   ;;  %s3712_s19 = sphi %s3761_s19, %s5239_s19   ;;  %s3708_s18 = sphi %s3759_s18, %s5238_s18  }
   0x6   : > { %s3784_s24 = sadd.s32 1, %s3720_s21   ;;  %s54_s25 = sadd.s32 1, %s3716_s20 }
   0x7   : > { %s51_s26 = ssub.s32 %s3720_s21, %s3784_s24  ;;  %p61_p0 = scmp.ne.s32.totalorder %s3716_s20, %s3712_s19 }
   0x8   : > { %p52_p1 = scmp.eq.s32.totalorder %s51_s26, 0  ;;  %p62_p2 = scmp.eq.s32.totalorder %s3720_s21, 0 }
   0x9   : > { %p67_p3 = scmp.ne.s32.totalorder %s3712_s19, %s3708_s18  ;;  %p68_p4 = scmp.eq.s32.totalorder %s3780_s22, 0 }
   0xa   : > { %s3796_s27 = scalar_select %p52_p1, %s3716_s20, %s54_s25  }
   0xb   : > { %p3798_p5 = por %p62_p2, %p61_p0  ;;  %p3802_p6 = por %p68_p4, %p67_p3 }
   0xc   : > { %p164_p7 = scmp.eq.s32.totalorder %s3780_s22, 1  ;;  %p170_p8 = scmp.eq.s32.totalorder %s2928_s23, 1 }
   0xd   : > { %s5125_s29 = scalar_select %p3802_p6, 1, 0 }
   0xe   : > { %p3571_p10 = scmp.lt.s32.totalorder %s3720_s21, 2  ;;  %p3809_p11 = por %p164_p7, %p61_p0 }
   0xf   : > { %p3813_p12 = por %p170_p8, %p67_p3  ;;  %s201_s7 = sand.u32 1, %s3716_s20  }
  0x10   : > { %s5126_s30 = scalar_select %p3809_p11, 1, 0 }
  0x11   : > { %s5127_s6 = scalar_select %p3813_p12, 1, 0 }
  0x12   : > { %s3088_s8 = sshll.u32 %s3720_s21, 13  ;;  %s2931_s9 = sshll.u32 %s201_s7, 9 }
  0x13   : > { %s3822_s12 = scalar_lea.hbm %s5070_s1, %s3088_s8  ;;  %s205_s13 = scalar_lea.vmem [#allocation2], %s2931_s9 }
  0x14   : > { %s212_s14 = sshll.u32 %s205_s13, 4  ;;  %p3826_p13 = pnand %p3571_p10, %p3798_p5  ;;  %s3830_s14 = int_to_ptr.vmem [resolvable:$true] %s212_s14 }
  0x15   : > { %s3832_s16 = scalar_lea.sflag [#allocation3], %s201_s7  ;;  %s3628_s17 = scalar_lea.hbm %s3822_s12, 8192 }
  0x16   : > { %p3629_p0 = scmp.ne.s32.totalorder %s3822_s12, %s3628_s17  ;;  %p3630_p1 = pneg %p3826_p13 }
  0x17   : > { %s3633_s26 = scalar_lea.hbm %s5070_s1, 16384  ;;  %p3634_p4 = scmp.lt.s32.totalorder %s3822_s12, %s5070_s1 }
  0x18   : > { %p3631_p2 = pnand %p3630_p1, %p3629_p0  ;;  %p3635_p5 = scmp.lt.s32.totalorder %s3633_s26, %s3628_s17 }
  0x1a   : > { %p3632_p3 = pneg %p3631_p2  ;;  %p3636_p7 = por %p3635_p5, %p3634_p4 }
  0x1c   : > { %p3637_p8 = pnand %p3636_p7, %p3632_p3 }
  0x1e   : > { %3640 = shalt.err (!%p3637_p8)
}
  0x1f   : > { %s3641_s7 = scalar_lea.vmem %s3830_s14, 8192  ;;  %s3722_s9 = smov [#allocation2]  }
  0x20   : > { %p3642_p10 = scmp.ne.s32.totalorder %s3830_s14, %s3641_s7  ;;  %s3646_s10 = sshll.u32 %s3722_s9, 4  ;;  %s3647_s10 = int_to_ptr.vmem [resolvable:$false] %s3646_s10 }
  0x21   : > { %s3648_s11 = scalar_lea.vmem %s3647_s10, 16384  ;;  %p3649_p2 = scmp.lt.s32.totalorder %s3830_s14, %s3647_s10 }
  0x22   : > { %p3644_p9 = pnand %p3642_p10, %p3630_p1  ;;  %p3650_p12 = scmp.lt.s32.totalorder %s3648_s11, %s3641_s7 }
  0x24   : > { %p3645_p0 = pneg %p3644_p9  ;;  %p3651_p11 = por %p3650_p12, %p3649_p2 }
  0x26   : > { %p3652_p6 = pnand %p3651_p11, %p3645_p0 }
  0x28   : > { %3655 = shalt.err (!%p3652_p6)
}
  0x29   : > { %s3723_s13 = smov 256   ;;  %s3724_s17 = smov 16  }
  0x2a   : > { %3566 = dma.hbm_to_vmem [thread:$0]  (!%p3826_p13), %s3822_s12, 8192, %s3830_s14, %s3832_s16, %s3723_s13, %s3723_s13, %s3724_s17  }
  0x2b   : > { %p2934_p9 = scmp.ge.s32.totalorder %s3720_s21, 1  ;;  %p235_p1 = scmp.lt.s32.totalorder %s3720_s21, 3 }
  0x2d   : > { %p236_p3 = pnand %p2934_p9, %p235_p1 }
  0x2f   : > { %239 = sbr.rel (%p236_p3) target bundleno = 2565 (0xa05), region = 40 }
  0x34   : > { %s3856_s23 = sand.u32 1, %s3712_s19   ;;  %p5129_p6 = scmp.ne.s32.totalorder %s5125_s29, 0 }
  0x35   : > { %s2935_s25 = sshll.u32 %s3856_s23, 9  ;;  %s242_s26 = scalar_lea.sflag [#allocation3], %s3856_s23 }
  0x36   : > { %s3860_s28 = scalar_lea.vmem [#allocation2], %s2935_s25 }
  0x37   : > { %3699 = dma.done.wait (%p5129_p6), %s242_s26, 8192  }
  0x38   : > { %3701 = vsyncadd (%p5129_p6), %s242_s26, 4294959104  ;;  %p286_p11 = scmp.lt.s32.totalorder %s3780_s22, 1  ;;  %v5077_v0 = vmov 0.0   ;;  %v3909_v8 = vld [vmem:[%s3860_s28 + $0x8] sm:$0xff]  ;;  %vm632_vm0 = vcmask 64512   ;;  %v332_v35 = vld [vmem:[%s3860_s28] sm:$0xff] }
  0x39   : > { %405 = vmatprep.subr.mxu0 %v5077_v0  ;;  %469 = vmatprep.mubr.f32.mxu0 %v3909_v8  ;;  %v631_v34 = vld [vmem:[%s5073_s4 + $0x8] sm:$0xff]  ;;  %v335_v36 = vld [vmem:[%s3860_s28 + $0x18] sm:$0xff]  ;;  %v334_v37 = vld [vmem:[%s3860_s28 + $0x10] sm:$0xff]  ;;  %vm1577_vm1 = vcmask 261120   ;;  %vm3726_vm2 = vmmov 0   ;;  %vm2647_vm3 = vcmask 130048  }
  0x3a   : > { %s3869_s12 = scalar_select %p286_p11, %s3780_s22, 1  ;;  %3297 = vmatprep.subr.mxu1 %v631_v34  ;;  %v337_v38 = vld [vmem:[%s3860_s28 + $0x28] sm:$0xff]  ;;  %v336_v39 = vld [vmem:[%s3860_s28 + $0x20] sm:$0xff]  ;;  %v339_v40 = vld [vmem:[%s3860_s28 + $0x38] sm:$0xff] }
  0x3b   : > { %3298 = vmatpush3.msra.mxu1 %v631_v34  ;;  %v338_v41 = vld [vmem:[%s3860_s28 + $0x30] sm:$0xff]  ;;  %v341_v42 = vld [vmem:[%s3860_s28 + $0x48] sm:$0xff]  ;;  %v340_v43 = vld [vmem:[%s3860_s28 + $0x40] sm:$0xff]  ;;  %s2936_s17 = sshll.u32 %s3856_s23, 3  ;;  %p5235_p13 = scmp.ne.s32.totalorder %s5126_s30, 0 }
  0x3c   : > { %s3089_s14 = sshll.u32 %s3869_s12, 8  ;;  %v4064_v44 = vld [vmem:[%s3860_s28 + $0x58] sm:$0xff]  ;;  %v4070_v45 = vld [vmem:[%s3860_s28 + $0x50] sm:$0xff]  ;;  %v4075_v46 = vld [vmem:[%s3860_s28 + $0x68] sm:$0xff]  ;;  %s3090_s26 = sshll.u32 %s3869_s12, 6 }
  0x3d   : > { %s3875_s8 = scalar_lea.vmem %s5069_s0, %s3089_s14  ;;  %v4082_v47 = vld [vmem:[%s3860_s28 + $0x60] sm:$0xff]  ;;  %v4087_v48 = vld [vmem:[%s3860_s28 + $0x78] sm:$0xff]  ;;  %v4094_v49 = vld [vmem:[%s3860_s28 + $0x70] sm:$0xff]  ;;  %s4837_s16 = scalar_lea.vmem %s5071_s2, %s3090_s26 }
  0x3e   : > { %v3878_v1 = vld [vmem:[%s3875_s8 + $0x78] sm:$0xff]  ;;  %v3881_v2 = vld [vmem:[%s3875_s8 + $0x70] sm:$0xff]  ;;  %v3886_v3 = vld [vmem:[%s3875_s8 + $0x68] sm:$0xff]  ;;  %s2941_s15 = sshll.u32 %s3869_s12, 3  ;;  %s285_s25 = scalar_lea.vmem [#allocation5], %s2936_s17 }
  0x3f   : > { %406 = vmatpush1.msra.mxu0 %v3878_v1  ;;  %v3891_v4 = vld [vmem:[%s3875_s8 + $0x60] sm:$0xff]  ;;  %v3896_v5 = vld [vmem:[%s3875_s8 + $0x58] sm:$0xff]  ;;  %v3901_v6 = vld [vmem:[%s3875_s8 + $0x50] sm:$0xff]  ;;  %s299_s29 = scalar_lea.vmem %s5072_s3, %s2941_s15  ;;  %s2822_s26 = sshll.u32 %s285_s25, 4  ;;  %s5029_s26 = int_to_ptr.vmem [resolvable:$true] %s2822_s26 }
  0x40   : > { %407 = vmatprep.subr.mxu0 %v5077_v0  ;;  %v3906_v7 = vld [vmem:[%s3875_s8 + $0x48] sm:$0xff]  ;;  %v3915_v9 = vld [vmem:[%s3875_s8 + $0x40] sm:$0xff]  ;;  %v3920_v10 = vld [vmem:[%s3875_s8 + $0x38] sm:$0xff]  ;;  %s3085_s14 = sshll.u32 %s3780_s22, 7  ;;  %s3728_s12 = smov [#allocation5]  }
  0x41   : > { %408 = vmatpush1.msra.mxu0 %v3881_v2  ;;  %v3925_v11 = vld [vmem:[%s3875_s8 + $0x30] sm:$0xff]  ;;  %v3930_v12 = vld [vmem:[%s3875_s8 + $0x28] sm:$0xff]  ;;  %v3935_v13 = vld [vmem:[%s3875_s8 + $0x20] sm:$0xff]  ;;  %s3660_s7 = sshll.u32 %s3728_s12, 4  ;;  %s3661_s7 = int_to_ptr.vmem [resolvable:$false] %s3660_s7 }
  0x42   : > { %409 = vmatprep.subr.mxu0 %v5077_v0  ;;  %v3940_v14 = vld [vmem:[%s3875_s8 + $0x18] sm:$0xff]  ;;  %v3945_v15 = vld [vmem:[%s3875_s8 + $0x10] sm:$0xff]  ;;  %v3950_v16 = vld [vmem:[%s3875_s8 + $0x8] sm:$0xff]  ;;  %s3662_s22 = scalar_lea.vmem %s3661_s7, 256  ;;  %p3663_p7 = scmp.lt.s32.totalorder %s5029_s26, %s3661_s7 }
  0x43   : > { %410 = vmatpush1.msra.mxu0 %v3886_v3  ;;  %v300_v17 = vld [vmem:[%s3875_s8] sm:$0xff]  ;;  %v3958_v18 = vld [vmem:[%s3875_s8 + $0xf8] sm:$0xff]  ;;  %v3962_v19 = vld [vmem:[%s3875_s8 + $0xf0] sm:$0xff] }
  0x44   : > { %411 = vmatprep.subr.mxu0 %v5077_v0  ;;  %v3967_v20 = vld [vmem:[%s3875_s8 + $0xe8] sm:$0xff]  ;;  %v3972_v21 = vld [vmem:[%s3875_s8 + $0xe0] sm:$0xff]  ;;  %v3977_v22 = vld [vmem:[%s3875_s8 + $0xd8] sm:$0xff]  ;;  %3299 = vmatprep.mubr.msk.f32.mxu1 %vm632_vm0, %v300_v17 }
  0x45   : > { %412 = vmatpush1.msra.mxu0 %v3891_v4  ;;  %v3982_v23 = vld [vmem:[%s3875_s8 + $0xd0] sm:$0xff]  ;;  %v3987_v24 = vld [vmem:[%s3875_s8 + $0xc8] sm:$0xff]  ;;  %v3992_v25 = vld [vmem:[%s3875_s8 + $0xc0] sm:$0xff]  ;;  %3300 = vmatmul.mubr.msk.f32.vlgmr.msra.gmra.mxu1 %vm632_vm0, %v3950_v16 }
  0x46   : > { %413 = vmatprep.subr.mxu0 %v5077_v0  ;;  %v3997_v26 = vld [vmem:[%s3875_s8 + $0xb8] sm:$0xff]  ;;  %v4002_v27 = vld [vmem:[%s3875_s8 + $0xb0] sm:$0xff]  ;;  %v4007_v28 = vld [vmem:[%s3875_s8 + $0xa8] sm:$0xff]  ;;  %3302 = vmatprep.mubr.msk.f32.mxu1 %vm632_vm0, %v3945_v15 }
  0x47   : > { %414 = vmatpush1.msra.mxu0 %v3896_v5  ;;  %v4012_v29 = vld [vmem:[%s3875_s8 + $0xa0] sm:$0xff]  ;;  %v4017_v30 = vld [vmem:[%s3875_s8 + $0x98] sm:$0xff]  ;;  %v4022_v31 = vld [vmem:[%s3875_s8 + $0x90] sm:$0xff] }
  0x48   : > { %415 = vmatprep.subr.mxu0 %v5077_v0  ;;  %v4027_v32 = vld [vmem:[%s3875_s8 + $0x88] sm:$0xff]  ;;  %v316_v33 = vld [vmem:[%s3875_s8 + $0x80] sm:$0xff]  ;;  %v4110_v52 = vld [vmem:[%s3860_s28 + $0x98] sm:$0xff]  ;;  %s2820_s8 = scalar_lea.hbm %s5074_s5, %s3085_s14 }
  0x49   : > { %416 = vmatpush1.msra.mxu0 %v3901_v6  ;;  %3303 = vmatmul.mubr.msk.f32.gmra.mxu1 %vm632_vm0, %v3940_v14  ;;  %v4099_v50 = vld [vmem:[%s3860_s28 + $0x88] sm:$0xff]  ;;  %v4106_v51 = vld [vmem:[%s3860_s28 + $0x80] sm:$0xff]  ;;  %v4117_v53 = vld [vmem:[%s3860_s28 + $0x90] sm:$0xff] }
  0x4a   : > { %417 = vmatprep.subr.mxu0 %v5077_v0  ;;  %3305 = vmatprep.mubr.msk.f32.mxu1 %vm632_vm0, %v3935_v13  ;;  %v4122_v54 = vld [vmem:[%s3860_s28 + $0xa8] sm:$0xff]  ;;  %v4129_v55 = vld [vmem:[%s3860_s28 + $0xa0] sm:$0xff]  ;;  %v4134_v56 = vld [vmem:[%s3860_s28 + $0xb8] sm:$0xff] }
  0x4b   : > { %418 = vmatpush1.msra.mxu0 %v3906_v7  ;;  %v4141_v57 = vld [vmem:[%s3860_s28 + $0xb0] sm:$0xff]  ;;  %v4146_v58 = vld [vmem:[%s3860_s28 + $0xc8] sm:$0xff]  ;;  %v4153_v59 = vld [vmem:[%s3860_s28 + $0xc0] sm:$0xff] }
  0x4c   : > { %419 = vmatprep.subr.mxu0 %v5077_v0  ;;  %v4158_v60 = vld [vmem:[%s3860_s28 + $0xd8] sm:$0xff]  ;;  %v4165_v61 = vld [vmem:[%s3860_s28 + $0xd0] sm:$0xff]  ;;  %v4170_v62 = vld [vmem:[%s3860_s28 + $0xe8] sm:$0xff] }
  0x4d   : > { %420 = vmatpush1.msra.mxu0 %v3915_v9  ;;  %3306 = vmatmul.mubr.msk.f32.gmra.mxu1 %vm632_vm0, %v3930_v12  ;;  %v4177_v63 = vld [vmem:[%s3860_s28 + $0xe0] sm:$0xff] }
  0x4e   : > { %421 = vmatprep.subr.mxu0 %v5077_v0  ;;  %3308 = vmatprep.mubr.msk.f32.mxu1 %vm632_vm0, %v3925_v11  ;;  %5130 = vst [vmem:[#allocation8_spill] sm:$0xff] %v4177_v63  ;;  %v4317_v34 = vld [vmem:[%s3860_s28 + $0x1e0] sm:$0xff] }
  0x4f   : > { %422 = vmatpush1.msra.mxu0 %v3920_v10  ;;  %5162 = vst [vmem:[#allocation40_spill] sm:$0xff] %v4317_v34 }
  0x50   : > { %423 = vmatprep.subr.mxu0 %v5077_v0 }
  0x51   : > { %424 = vmatpush1.msra.mxu0 %v3925_v11  ;;  %3309 = vmatmul.mubr.msk.f32.gmra.mxu1 %vm632_vm0, %v3920_v10  ;;  %v4220_v10 = vld [vmem:[%s3860_s28 + $0x120] sm:$0xff]  ;;  %v4224_v11 = vld [vmem:[%s3860_s28 + $0x138] sm:$0xff] }
  0x52   : > { %425 = vmatprep.subr.mxu0 %v5077_v0  ;;  %3311 = vmatprep.mubr.msk.f32.mxu1 %vm632_vm0, %v3915_v9  ;;  %v630_v9 = vld [vmem:[%s5073_s4] sm:$0xff]  ;;  %5138 = vst [vmem:[#allocation16_spill] sm:$0xff] %v4220_v10  ;;  %5139 = vst [vmem:[#allocation17_spill] sm:$0xff] %v4224_v11 }
  0x53   : > { %426 = vmatpush1.msra.mxu0 %v3930_v12  ;;  %3347 = vmatprep.subr.mxu1 %v630_v9  ;;  %v4229_v12 = vld [vmem:[%s3860_s28 + $0x130] sm:$0xff] }
  0x54   : > { %427 = vmatprep.subr.mxu0 %v5077_v0  ;;  %3348 = vmatpush3.msra.mxu1 %v630_v9  ;;  %5140 = vst [vmem:[#allocation18_spill] sm:$0xff] %v4229_v12 }
  0x55   : > { %428 = vmatpush1.msra.mxu0 %v3935_v13  ;;  %3312 = vmatmul.mubr.msk.f32.gmra.mxu1 %vm632_vm0, %v3906_v7  ;;  %v4212_v7 = vld [vmem:[%s3860_s28 + $0x128] sm:$0xff] }
  0x56   : > { %429 = vmatprep.subr.mxu0 %v5077_v0  ;;  %3314 = vmatprep.mubr.msk.f32.mxu1 %vm632_vm0, %v3901_v6  ;;  %v4209_v6 = vld [vmem:[%s3860_s28 + $0x110] sm:$0xff]  ;;  %5137 = vst [vmem:[#allocation15_spill] sm:$0xff] %v4212_v7  ;;  %v4232_v13 = vld [vmem:[%s3860_s28 + $0x148] sm:$0xff] }
  0x57   : > { %430 = vmatpush1.msra.mxu0 %v3940_v14  ;;  %5136 = vst [vmem:[#allocation14_spill] sm:$0xff] %v4209_v6  ;;  %1344 = vmatprep.subr.mxu1 %v5077_v0  ;;  %5141 = vst [vmem:[#allocation19_spill] sm:$0xff] %v4232_v13  ;;  %v4237_v14 = vld [vmem:[%s3860_s28 + $0x140] sm:$0xff] }
  0x58   : > { %431 = vmatprep.subr.mxu0 %v5077_v0  ;;  %5142 = vst [vmem:[#allocation20_spill] sm:$0xff] %v4237_v14 }
  0x59   : > { %432 = vmatpush1.msra.mxu0 %v3945_v15  ;;  %3315 = vmatmul.mubr.msk.f32.gmra.mxu1 %vm632_vm0, %v3896_v5  ;;  %v4204_v5 = vld [vmem:[%s3860_s28 + $0x118] sm:$0xff] }
  0x5a   : > { %433 = vmatprep.subr.mxu0 %v5077_v0  ;;  %3317 = vmatprep.mubr.msk.f32.mxu1 %vm632_vm0, %v3891_v4  ;;  %v4201_v4 = vld [vmem:[%s3860_s28 + $0x100] sm:$0xff]  ;;  %5135 = vst [vmem:[#allocation13_spill] sm:$0xff] %v4204_v5  ;;  %v4240_v15 = vld [vmem:[%s3860_s28 + $0x158] sm:$0xff] }
  0x5b   : > { %434 = vmatpush1.msra.mxu0 %v3950_v16  ;;  %5134 = vst [vmem:[#allocation12_spill] sm:$0xff] %v4201_v4  ;;  %5143 = vst [vmem:[#allocation21_spill] sm:$0xff] %v4240_v15  ;;  %v4245_v16 = vld [vmem:[%s3860_s28 + $0x150] sm:$0xff] }
  0x5c   : > { %435 = vmatprep.subr.mxu0 %v5077_v0  ;;  %5144 = vst [vmem:[#allocation22_spill] sm:$0xff] %v4245_v16 }
  0x5d   : > { %436 = vmatpush1.msra.mxu0 %v300_v17  ;;  %3318 = vmatmul.mubr.msk.f32.gmra.mxu1 %vm632_vm0, %v3886_v3  ;;  %v4194_v3 = vld [vmem:[%s3860_s28 + $0x108] sm:$0xff] }
  0x5e   : > { %437 = vmatprep.subr.mxu0 %v5077_v0  ;;  %3320 = vmatprep.mubr.msk.f32.mxu1 %vm632_vm0, %v3881_v2  ;;  %v4189_v2 = vld [vmem:[%s3860_s28 + $0xf0] sm:$0xff]  ;;  %5133 = vst [vmem:[#allocation11_spill] sm:$0xff] %v4194_v3  ;;  %v4248_v17 = vld [vmem:[%s3860_s28 + $0x168] sm:$0xff] }
  0x5f   : > { %438 = vmatpush2.msra.mxu0 %v3958_v18  ;;  %5132 = vst [vmem:[#allocation10_spill] sm:$0xff] %v4189_v2  ;;  %5145 = vst [vmem:[#allocation23_spill] sm:$0xff] %v4248_v17 }
  0x60   : > { %439 = vmatprep.subr.mxu0 %v5077_v0 }
  0x61   : > { %440 = vmatpush2.msra.mxu0 %v3962_v19  ;;  %3321 = vmatmul.mubr.msk.f32.gmra.mxu1 %vm632_vm0, %v3878_v1  ;;  %v4182_v1 = vld [vmem:[%s3860_s28 + $0xf8] sm:$0xff] }
  0x62   : > { %441 = vmatprep.subr.mxu0 %v5077_v0  ;;  %3323 = vmatprep.mubr.msk.f32.mxu1 %vm632_vm0, %v316_v33  ;;  %5131 = vst [vmem:[#allocation9_spill] sm:$0xff] %v4182_v1 }
  0x63   : > { %442 = vmatpush2.msra.mxu0 %v3967_v20 }
  0x64   : > { %443 = vmatprep.subr.mxu0 %v5077_v0 }
  0x65   : > { %444 = vmatpush2.msra.mxu0 %v3972_v21  ;;  %3324 = vmatmul.mubr.msk.f32.gmra.mxu1 %vm632_vm0, %v4027_v32 }
  0x66   : > { %445 = vmatprep.subr.mxu0 %v5077_v0  ;;  %3326 = vmatprep.mubr.msk.f32.mxu1 %vm632_vm0, %v4022_v31 }
  0x67   : > { %446 = vmatpush2.msra.mxu0 %v3977_v22 }
  0x68   : > { %447 = vmatprep.subr.mxu0 %v5077_v0 }
  0x69   : > { %448 = vmatpush2.msra.mxu0 %v3982_v23  ;;  %3327 = vmatmul.mubr.msk.f32.gmra.mxu1 %vm632_vm0, %v4017_v30 }
  0x6a   : > { %449 = vmatprep.subr.mxu0 %v5077_v0  ;;  %3329 = vmatprep.mubr.msk.f32.mxu1 %vm632_vm0, %v4012_v29 }
  0x6b   : > { %450 = vmatpush2.msra.mxu0 %v3987_v24 }
  0x6c   : > { %451 = vmatprep.subr.mxu0 %v5077_v0 }
  0x6d   : > { %452 = vmatpush2.msra.mxu0 %v3992_v25  ;;  %3330 = vmatmul.mubr.msk.f32.gmra.mxu1 %vm632_vm0, %v4007_v28 }
  0x6e   : > { %453 = vmatprep.subr.mxu0 %v5077_v0  ;;  %3332 = vmatprep.mubr.msk.f32.mxu1 %vm632_vm0, %v4002_v27 }
  0x6f   : > { %454 = vmatpush2.msra.mxu0 %v3997_v26 }
  0x70   : > { %455 = vmatprep.subr.mxu0 %v5077_v0 }
  0x71   : > { %456 = vmatpush2.msra.mxu0 %v4002_v27  ;;  %3333 = vmatmul.mubr.msk.f32.gmra.mxu1 %vm632_vm0, %v3997_v26  ;;  %v4285_v26 = vld [vmem:[%s3860_s28 + $0x1a0] sm:$0xff]  ;;  %v4288_v27 = vld [vmem:[%s3860_s28 + $0x1b8] sm:$0xff] }
  0x72   : > { %457 = vmatprep.subr.mxu0 %v5077_v0  ;;  %3335 = vmatprep.mubr.msk.f32.mxu1 %vm632_vm0, %v3992_v25  ;;  %v4280_v25 = vld [vmem:[%s3860_s28 + $0x1a8] sm:$0xff]  ;;  %5154 = vst [vmem:[#allocation32_spill] sm:$0xff] %v4285_v26  ;;  %5155 = vst [vmem:[#allocation33_spill] sm:$0xff] %v4288_v27 }
  0x73   : > { %458 = vmatpush2.msra.mxu0 %v4007_v28  ;;  %5153 = vst [vmem:[#allocation31_spill] sm:$0xff] %v4280_v25  ;;  %v4293_v28 = vld [vmem:[%s3860_s28 + $0x1b0] sm:$0xff] }
  0x74   : > { %459 = vmatprep.subr.mxu0 %v5077_v0  ;;  %5156 = vst [vmem:[#allocation34_spill] sm:$0xff] %v4293_v28 }
  0x75   : > { %460 = vmatpush2.msra.mxu0 %v4012_v29  ;;  %3336 = vmatmul.mubr.msk.f32.gmra.mxu1 %vm632_vm0, %v3987_v24  ;;  %v4277_v24 = vld [vmem:[%s3860_s28 + $0x190] sm:$0xff]  ;;  %v4296_v29 = vld [vmem:[%s3860_s28 + $0x1c8] sm:$0xff] }
  0x76   : > { %461 = vmatprep.subr.mxu0 %v5077_v0  ;;  %3338 = vmatprep.mubr.msk.f32.mxu1 %vm632_vm0, %v3982_v23  ;;  %v4272_v23 = vld [vmem:[%s3860_s28 + $0x198] sm:$0xff]  ;;  %5152 = vst [vmem:[#allocation30_spill] sm:$0xff] %v4277_v24  ;;  %5157 = vst [vmem:[#allocation35_spill] sm:$0xff] %v4296_v29 }
  0x77   : > { %462 = vmatpush2.msra.mxu0 %v4017_v30  ;;  %5151 = vst [vmem:[#allocation29_spill] sm:$0xff] %v4272_v23  ;;  %v4301_v30 = vld [vmem:[%s3860_s28 + $0x1c0] sm:$0xff] }
  0x78   : > { %463 = vmatprep.subr.mxu0 %v5077_v0  ;;  %5158 = vst [vmem:[#allocation36_spill] sm:$0xff] %v4301_v30 }
  0x79   : > { %464 = vmatpush2.msra.mxu0 %v4022_v31  ;;  %3339 = vmatmul.mubr.msk.f32.gmra.mxu1 %vm632_vm0, %v3977_v22  ;;  %v4269_v22 = vld [vmem:[%s3860_s28 + $0x180] sm:$0xff]  ;;  %v4304_v31 = vld [vmem:[%s3860_s28 + $0x1d8] sm:$0xff] }
  0x7a   : > { %465 = vmatprep.subr.mxu0 %v5077_v0  ;;  %3341 = vmatprep.mubr.msk.f32.mxu1 %vm632_vm0, %v3972_v21  ;;  %v4264_v21 = vld [vmem:[%s3860_s28 + $0x188] sm:$0xff]  ;;  %5150 = vst [vmem:[#allocation28_spill] sm:$0xff] %v4269_v22  ;;  %5159 = vst [vmem:[#allocation37_spill] sm:$0xff] %v4304_v31 }
  0x7b   : > { %466 = vmatpush2.msra.mxu0 %v4027_v32  ;;  %5149 = vst [vmem:[#allocation27_spill] sm:$0xff] %v4264_v21  ;;  %v4309_v32 = vld [vmem:[%s3860_s28 + $0x1d0] sm:$0xff] }
  0x7c   : > { %467 = vmatprep.subr.mxu0 %v5077_v0  ;;  %5160 = vst [vmem:[#allocation38_spill] sm:$0xff] %v4309_v32 }
  0x7d   : > { %468 = vmatpush2.msra.mxu0 %v316_v33  ;;  %3342 = vmatmul.mubr.msk.f32.gmra.mxu1 %vm632_vm0, %v3967_v20  ;;  %v4261_v20 = vld [vmem:[%s3860_s28 + $0x170] sm:$0xff]  ;;  %v4312_v33 = vld [vmem:[%s3860_s28 + $0x1e8] sm:$0xff] }
  0x7e   : > { %470 = vmatmul.mubr.f32.vlgmr.msra.gmra.mxu0 %v332_v35  ;;  %3344 = vmatprep.mubr.msk.f32.mxu1 %vm632_vm0, %v3962_v19  ;;  %v4256_v19 = vld [vmem:[%s3860_s28 + $0x178] sm:$0xff]  ;;  %5148 = vst [vmem:[#allocation26_spill] sm:$0xff] %v4261_v20  ;;  %5161 = vst [vmem:[#allocation39_spill] sm:$0xff] %v4312_v33 }
  0x7f   : > { %474 = vmatprep.mubr.f32.mxu0 %v335_v36  ;;  %5147 = vst [vmem:[#allocation25_spill] sm:$0xff] %v4256_v19  ;;  %v4320_v35 = vld [vmem:[%s3860_s28 + $0x1f8] sm:$0xff]  ;;  %v4325_v36 = vld [vmem:[%s3860_s28 + $0x1f0] sm:$0xff] }
  0x80   : > { %5163 = vst [vmem:[#allocation41_spill] sm:$0xff] %v4320_v35  ;;  %5164 = vst [vmem:[#allocation42_spill] sm:$0xff] %v4325_v36 }
  0x81   : > { %3345 = vmatmul.mubr.msk.f32.gmra.mxu1 %vm632_vm0, %v3958_v18  ;;  %v4253_v18 = vld [vmem:[%s3860_s28 + $0x160] sm:$0xff] }
  0x82   : > { %475 = vmatmul.mubr.f32.gmra.mxu0 %v334_v37  ;;  %5146 = vst [vmem:[#allocation24_spill] sm:$0xff] %v4253_v18 }
  0x83   : > { %479 = vmatprep.mubr.f32.mxu0 %v337_v38 }
  0x86   : > { %480 = vmatmul.mubr.f32.gmra.mxu0 %v336_v39 }
  0x87   : > { %484 = vmatprep.mubr.f32.mxu0 %v339_v40 }
  0x8a   : > { %485 = vmatmul.mubr.f32.gmra.mxu0 %v338_v41 }
  0x8b   : > { %489 = vmatprep.mubr.f32.mxu0 %v341_v42 }
  0x8e   : > { %490 = vmatmul.mubr.f32.gmra.mxu0 %v340_v43 }
  0x8f   : > { %494 = vmatprep.mubr.f32.mxu0 %v4064_v44 }
  0x92   : > { %495 = vmatmul.mubr.f32.gmra.mxu0 %v4070_v45 }
  0x93   : > { %499 = vmatprep.mubr.f32.mxu0 %v4075_v46 }
  0x96   : > { %500 = vmatmul.mubr.f32.gmra.mxu0 %v4082_v47 }
  0x97   : > { %504 = vmatprep.mubr.f32.mxu0 %v4087_v48 }
  0x9a   : > { %505 = vmatmul.mubr.f32.gmra.mxu0 %v4094_v49 }
  0x9b   : > { %509 = vmatprep.mubr.f32.mxu0 %v4099_v50 }
  0x9e   : > { %510 = vmatmul.mubr.f32.gmra.mxu0 %v4106_v51 }
  0x9f   : > { %514 = vmatprep.mubr.f32.mxu0 %v4110_v52 }
  0xa2   : > { %515 = vmatmul.mubr.f32.gmra.mxu0 %v4117_v53 }
  0xa3   : > { %519 = vmatprep.mubr.f32.mxu0 %v4122_v54 }
  0xa6   : > { %520 = vmatmul.mubr.f32.gmra.mxu0 %v4129_v55 }
  0xa7   : > { %524 = vmatprep.mubr.f32.mxu0 %v4134_v56 }
  0xaa   : > { %525 = vmatmul.mubr.f32.gmra.mxu0 %v4141_v57 }
  0xab   : > { %529 = vmatprep.mubr.f32.mxu0 %v4146_v58 }
  0xae   : > { %530 = vmatmul.mubr.f32.gmra.mxu0 %v4153_v59 }
  0xaf   : > { %534 = vmatprep.mubr.f32.mxu0 %v4158_v60 }
  0xb2   : > { %535 = vmatmul.mubr.f32.gmra.mxu0 %v4165_v61 }
  0xb3   : > { %539 = vmatprep.mubr.f32.mxu0 %v4170_v62 }
  0xb6   : > { %540 = vmatmul.mubr.f32.gmra.mxu0 %v4177_v63 }
  0xb7   : > { %544 = vmatprep.mubr.f32.mxu0 %v4182_v1 }
  0xba   : > { %545 = vmatmul.mubr.f32.gmra.mxu0 %v4189_v2 }
  0xbb   : > { %549 = vmatprep.mubr.f32.mxu0 %v4194_v3 }
  0xbe   : > { %550 = vmatmul.mubr.f32.gmra.mxu0 %v4201_v4 }
  0xbf   : > { %554 = vmatprep.mubr.f32.mxu0 %v4204_v5 }
  0xc2   : > { %555 = vmatmul.mubr.f32.gmra.mxu0 %v4209_v6 }
  0xc3   : > { %559 = vmatprep.mubr.f32.mxu0 %v4212_v7 }
  0xc6   : > { %560 = vmatmul.mubr.f32.gmra.mxu0 %v4220_v10 }
  0xc7   : > { %564 = vmatprep.mubr.f32.mxu0 %v4224_v11 }
  0xca   : > { %565 = vmatmul.mubr.f32.gmra.mxu0 %v4229_v12  ;;  %v4441_v12 = vld [vmem:[%s5073_s4 + $0x10] ss:$0 sm:$0xff] }
  0xcb   : > { %569 = vmatprep.mubr.f32.mxu0 %v4232_v13 }
  0xce   : > { %570 = vmatmul.mubr.f32.gmra.mxu0 %v4237_v14 }
  0xcf   : > { %574 = vmatprep.mubr.f32.mxu0 %v4240_v15 }
  0xd2   : > { %575 = vmatmul.mubr.f32.gmra.mxu0 %v4245_v16 }
  0xd3   : > { %579 = vmatprep.mubr.f32.mxu0 %v4248_v17 }
  0xd6   : > { %580 = vmatmul.mubr.f32.gmra.mxu0 %v4253_v18 }
  0xd7   : > { %584 = vmatprep.mubr.f32.mxu0 %v4256_v19 }
  0xda   : > { %585 = vmatmul.mubr.f32.gmra.mxu0 %v4261_v20 }
  0xdb   : > { %589 = vmatprep.mubr.f32.mxu0 %v4264_v21 }
  0xde   : > { %590 = vmatmul.mubr.f32.gmra.mxu0 %v4269_v22 }
  0xdf   : > { %594 = vmatprep.mubr.f32.mxu0 %v4272_v23 }
  0xe2   : > { %595 = vmatmul.mubr.f32.gmra.mxu0 %v4277_v24 }
  0xe3   : > { %599 = vmatprep.mubr.f32.mxu0 %v4280_v25 }
  0xe6   : > { %600 = vmatmul.mubr.f32.gmra.mxu0 %v4285_v26 }
  0xe7   : > { %604 = vmatprep.mubr.f32.mxu0 %v4288_v27 }
  0xea   : > { %605 = vmatmul.mubr.f32.gmra.mxu0 %v4293_v28 }
  0xeb   : > { %609 = vmatprep.mubr.f32.mxu0 %v4296_v29 }
  0xee   : > { %610 = vmatmul.mubr.f32.gmra.mxu0 %v4301_v30 }
  0xef   : > { %614 = vmatprep.mubr.f32.mxu0 %v4304_v31 }
  0xf2   : > { %615 = vmatmul.mubr.f32.gmra.mxu0 %v4309_v32 }
  0xf3   : > { %619 = vmatprep.mubr.f32.mxu0 %v4312_v33 }
  0xf6   : > { %620 = vmatmul.mubr.f32.gmra.mxu0 %v4317_v34 }
  0xf7   : > { %624 = vmatprep.mubr.f32.mxu0 %v4320_v35 }
  0xfa   : > { %625 = vmatmul.mubr.f32.gmra.mxu0 %v4325_v36 }
 0x13e   : > { %v471_v37 = vpop.f32.mrf.mxu0 }
 0x13f   : > { %3349 = vmatprep.mubr.msk.f32.mxu1 %vm632_vm0, %v471_v37 }
 0x140   : > { %v473_v38 = vpop.f32.mrf.mxu0 }
 0x142   : > { %v476_v39 = vpop.f32.mrf.mxu0 }
 0x143   : > { %3350 = vmatmul.mubr.msk.f32.vlgmr.msra.gmra.mxu1 %vm632_vm0, %v476_v39 }
 0x144   : > { %v478_v40 = vpop.f32.mrf.mxu0 }
 0x146   : > { %v481_v41 = vpop.f32.mrf.mxu0 }
 0x147   : > { %3352 = vmatprep.mubr.msk.f32.mxu1 %vm632_vm0, %v481_v41 }
 0x148   : > { %v483_v42 = vpop.f32.mrf.mxu0 }
 0x14a   : > { %v486_v43 = vpop.f32.mrf.mxu0 }
 0x14b   : > { %3353 = vmatmul.mubr.msk.f32.gmra.mxu1 %vm632_vm0, %v486_v43 }
 0x14c   : > { %v488_v9 = vpop.f32.mrf.mxu0 }
 0x14e   : > { %v491_v0 = vpop.f32.mrf.mxu0 }
 0x14f   : > { %3355 = vmatprep.mubr.msk.f32.mxu1 %vm632_vm0, %v491_v0 }
 0x150   : > { %v493_v36 = vpop.f32.mrf.mxu0 }
 0x152   : > { %v496_v35 = vpop.f32.mrf.mxu0 }
 0x153   : > { %3356 = vmatmul.mubr.msk.f32.gmra.mxu1 %vm632_vm0, %v496_v35 }
 0x154   : > { %v498_v37 = vpop.f32.mrf.mxu0 }
 0x156   : > { %v501_v38 = vpop.f32.mrf.mxu0 }
 0x157   : > { %3358 = vmatprep.mubr.msk.f32.mxu1 %vm632_vm0, %v501_v38 }
 0x158   : > { %v503_v39 = vpop.f32.mrf.mxu0 }
 0x15a   : > { %v506_v40 = vpop.f32.mrf.mxu0 }
 0x15b   : > { %3359 = vmatmul.mubr.msk.f32.gmra.mxu1 %vm632_vm0, %v506_v40 }
 0x15c   : > { %v508_v41 = vpop.f32.mrf.mxu0 }
 0x15e   : > { %v511_v42 = vpop.f32.mrf.mxu0 }
 0x15f   : > { %3361 = vmatprep.mubr.msk.f32.mxu1 %vm632_vm0, %v511_v42 }
 0x160   : > { %v513_v43 = vpop.f32.mrf.mxu0 }
 0x162   : > { %v516_v9 = vpop.f32.mrf.mxu0 }
 0x163   : > { %3362 = vmatmul.mubr.msk.f32.gmra.mxu1 %vm632_vm0, %v516_v9 }
 0x164   : > { %v518_v0 = vpop.f32.mrf.mxu0 }
 0x166   : > { %v521_v36 = vpop.f32.mrf.mxu0 }
 0x167   : > { %3364 = vmatprep.mubr.msk.f32.mxu1 %vm632_vm0, %v521_v36 }
 0x168   : > { %v523_v35 = vpop.f32.mrf.mxu0 }
 0x16a   : > { %v526_v37 = vpop.f32.mrf.mxu0 }
 0x16b   : > { %3365 = vmatmul.mubr.msk.f32.gmra.mxu1 %vm632_vm0, %v526_v37 }
 0x16c   : > { %v528_v38 = vpop.f32.mrf.mxu0 }
 0x16e   : > { %v531_v39 = vpop.f32.mrf.mxu0 }
 0x16f   : > { %3367 = vmatprep.mubr.msk.f32.mxu1 %vm632_vm0, %v531_v39  ;;  %v4346_v39 = vpop.f32.mrf.mxu1 }
 0x170   : > { %v533_v40 = vpop.f32.mrf.mxu0 }
 0x172   : > { %v536_v41 = vpop.f32.mrf.mxu0 }
 0x173   : > { %3368 = vmatmul.mubr.msk.f32.gmra.mxu1 %vm632_vm0, %v536_v41  ;;  %v1576_v41 = vld [vmem:[%s5073_s4 + $0x50] sm:$0xff] }
 0x174   : > { %v538_v42 = vpop.f32.mrf.mxu0  ;;  %3397 = vmatprep.subr.mxu0 %v1576_v41 }
 0x175   : > { %3398 = vmatpush3.msra.mxu0 %v1576_v41 }
 0x176   : > { %v541_v43 = vpop.f32.mrf.mxu0 }
 0x177   : > { %3370 = vmatprep.mubr.msk.f32.mxu1 %vm632_vm0, %v541_v43  ;;  %v1575_v43 = vld [vmem:[%s5073_s4 + $0x48] sm:$0xff] }
 0x178   : > { %v543_v9 = vpop.f32.mrf.mxu0  ;;  %3399 = vmatprep.subr.mxu0 %v1575_v43 }
 0x179   : > { %v4355_v9 = vpop.f32.mrf.mxu1  ;;  %3400 = vmatpush3.msra.mxu0 %v1575_v43 }
 0x17a   : > { %v546_v0 = vpop.f32.mrf.mxu0 }
 0x17b   : > { %3371 = vmatmul.mubr.msk.f32.gmra.mxu1 %vm632_vm0, %v546_v0 }
 0x17c   : > { %v548_v36 = vpop.f32.mrf.mxu0 }
 0x17d   : > { %v1574_v36 = vld [vmem:[%s5073_s4 + $0x40] sm:$0xff] }
 0x17e   : > { %v551_v35 = vpop.f32.mrf.mxu0  ;;  %3401 = vmatprep.subr.mxu0 %v1574_v36 }
 0x17f   : > { %3373 = vmatprep.mubr.msk.f32.mxu1 %vm632_vm0, %v551_v35  ;;  %3402 = vmatpush3.msra.mxu0 %v1574_v36 }
 0x180   : > { %v553_v37 = vpop.f32.mrf.mxu0 }
 0x181   : > { %v1573_v37 = vld [vmem:[%s5073_s4 + $0x38] sm:$0xff] }
 0x182   : > { %v556_v38 = vpop.f32.mrf.mxu0  ;;  %3403 = vmatprep.subr.mxu0 %v1573_v37 }
 0x183   : > { %3374 = vmatmul.mubr.msk.f32.gmra.mxu1 %vm632_vm0, %v556_v38  ;;  %v4364_v38 = vpop.f32.mrf.mxu1  ;;  %3404 = vmatpush3.msra.mxu0 %v1573_v37 }
 0x184   : > { %v558_v40 = vpop.f32.mrf.mxu0 }
 0x186   : > { %v561_v42 = vpop.f32.mrf.mxu0 }
 0x187   : > { %3376 = vmatprep.mubr.msk.f32.mxu1 %vm632_vm0, %v561_v42  ;;  %v4367_v42 = vpop.f32.mrf.mxu1 }
 0x188   : > { %v563_v0 = vpop.f32.mrf.mxu0 }
 0x189   : > { %v4370_v36 = vpop.f32.mrf.mxu1 }
 0x18a   : > { %v566_v35 = vpop.f32.mrf.mxu0 }
 0x18b   : > { %3377 = vmatmul.mubr.msk.f32.gmra.mxu1 %vm632_vm0, %v566_v35  ;;  %v4373_v35 = vpop.f32.mrf.mxu1 }
 0x18c   : > { %v568_v40 = vpop.f32.mrf.mxu0 }
 0x18d   : > { %v4376_v37 = vpop.f32.mrf.mxu1 }
 0x18e   : > { %v571_v41 = vpop.f32.mrf.mxu0 }
 0x18f   : > { %3379 = vmatprep.mubr.msk.f32.mxu1 %vm632_vm0, %v571_v41 }
 0x190   : > { %v573_v43 = vpop.f32.mrf.mxu0 }
 0x191   : > { %v4379_v43 = vpop.f32.mrf.mxu1 }
 0x192   : > { %v576_v0 = vpop.f32.mrf.mxu0 }
 0x193   : > { %3380 = vmatmul.mubr.msk.f32.gmra.mxu1 %vm632_vm0, %v576_v0 }
 0x194   : > { %v578_v34 = vpop.f32.mrf.mxu0 }
 0x195   : > { %v4382_v34 = vpop.f32.mrf.mxu1 }
 0x196   : > { %v581_v33 = vpop.f32.mrf.mxu0 }
 0x197   : > { %3382 = vmatprep.mubr.msk.f32.mxu1 %vm632_vm0, %v581_v33 }
 0x198   : > { %v583_v32 = vpop.f32.mrf.mxu0 }
 0x199   : > { %v4385_v32 = vpop.f32.mrf.mxu1 }
 0x19a   : > { %v586_v40 = vpop.f32.mrf.mxu0 }
 0x19b   : > { %3383 = vmatmul.mubr.msk.f32.gmra.mxu1 %vm632_vm0, %v586_v40 }
 0x19c   : > { %v588_v41 = vpop.f32.mrf.mxu0 }
 0x19d   : > { %v4388_v41 = vpop.f32.mrf.mxu1 }
 0x19e   : > { %v591_v31 = vpop.f32.mrf.mxu0 }
 0x19f   : > { %3385 = vmatprep.mubr.msk.f32.mxu1 %vm632_vm0, %v591_v31 }
 0x1a0   : > { %v593_v0 = vpop.f32.mrf.mxu0 }
 0x1a1   : > { %v4391_v0 = vpop.f32.mrf.mxu1 }
 0x1a2   : > { %v596_v30 = vpop.f32.mrf.mxu0 }
 0x1a3   : > { %3386 = vmatmul.mubr.msk.f32.gmra.mxu1 %vm632_vm0, %v596_v30 }
 0x1a4   : > { %v598_v33 = vpop.f32.mrf.mxu0 }
 0x1a5   : > { %v4394_v33 = vpop.f32.mrf.mxu1 }
 0x1a6   : > { %v601_v29 = vpop.f32.mrf.mxu0 }
 0x1a7   : > { %3388 = vmatprep.mubr.msk.f32.mxu1 %vm632_vm0, %v601_v29 }
 0x1a8   : > { %v603_v40 = vpop.f32.mrf.mxu0 }
 0x1a9   : > { %v4397_v40 = vpop.f32.mrf.mxu1 }
 0x1aa   : > { %v606_v28 = vpop.f32.mrf.mxu0 }
 0x1ab   : > { %3389 = vmatmul.mubr.msk.f32.gmra.mxu1 %vm632_vm0, %v606_v28 }
 0x1ac   : > { %v608_v31 = vpop.f32.mrf.mxu0 }
 0x1ad   : > { %v4400_v31 = vpop.f32.mrf.mxu1 }
 0x1ae   : > { %v611_v27 = vpop.f32.mrf.mxu0 }
 0x1af   : > { %3391 = vmatprep.mubr.msk.f32.mxu1 %vm632_vm0, %v611_v27 }
 0x1b0   : > { %v613_v30 = vpop.f32.mrf.mxu0 }
 0x1b1   : > { %v4403_v30 = vpop.f32.mrf.mxu1 }
 0x1b2   : > { %v616_v26 = vpop.f32.mrf.mxu0 }
 0x1b3   : > { %3392 = vmatmul.mubr.msk.f32.gmra.mxu1 %vm632_vm0, %v616_v26  ;;  %v4405_v26 = vpop.f32.mrf.mxu1 }
 0x1b4   : > { %v618_v29 = vpop.f32.mrf.mxu0 }
 0x1b5   : > { %v4407_v23 = vpop.f32.mrf.mxu1 }
 0x1b6   : > { %v621_v25 = vpop.f32.mrf.mxu0 }
 0x1b7   : > { %3394 = vmatprep.mubr.msk.f32.mxu1 %vm632_vm0, %v621_v25  ;;  %v4409_v29 = vpop.f32.mrf.mxu1 }
 0x1b8   : > { %v623_v28 = vpop.f32.mrf.mxu0 }
 0x1b9   : > { %v4411_v25 = vpop.f32.mrf.mxu1 }
 0x1ba   : > { %v626_v24 = vpop.f32.mrf.mxu0 }
 0x1bb   : > { %3395 = vmatmul.mubr.msk.f32.gmra.mxu1 %vm632_vm0, %v626_v24  ;;  %v4413_v22 = vpop.f32.mrf.mxu1 }
 0x1bc   : > { %v628_v27 = vpop.f32.mrf.mxu0  ;;  %1408 = vmatprep.mubr.f32.mxu1 %v3909_v8 }
 0x1bd   : > { %v4415_v28 = vpop.f32.mrf.mxu1 }
 0x1bf   : > { %v4417_v24 = vpop.f32.mrf.mxu1 }
 0x1c1   : > { %v4419_v21 = vpop.f32.mrf.mxu1 }
 0x1c3   : > { %v4421_v27 = vpop.f32.mrf.mxu1 }
 0x1c5   : > { %v4423_v8 = vpop.f32.mrf.mxu1 }
 0x1c7   : > { %v4425_v20 = vpop.f32.mrf.mxu1 }
 0x1c9   : > { %v4427_v19 = vpop.f32.mrf.mxu1 }
 0x1cb   : > { %v4429_v18 = vpop.f32.mrf.mxu1 }
 0x1cd   : > { %v4431_v17 = vpop.f32.mrf.mxu1 }
 0x1cf   : > { %v4433_v16 = vpop.f32.mrf.mxu1 }
 0x1d1   : > { %v4435_v15 = vpop.f32.mrf.mxu1 }
 0x203   : > { %v3351_v14 = vpop.f32.mrf.mxu1 }
 0x204   : > { %v1122_v13 = vadd.f32 %v3351_v14, %v4346_v39 }
 0x205   : > { %v1116_v11 = vpop.f32.mrf.mxu1 }
 0x206   : > { %v1117_v10 = vadd.f32 %v1116_v11, %v4355_v9  ;;  %v4445_v7 = vadd.f32 %v4441_v12, %v1122_v13 }
 0x208   : > { %v4448_v6 = vadd.f32 %v4441_v12, %v1117_v10  ;;  %v5112_v4 = vmax.f32 %v4445_v7, 0.0 }
 0x20a   : > { %v5111_v5 = vmax.f32 %v4448_v6, 0.0 }
 0x20b   : > { %v3354_v14 = vpop.f32.mrf.mxu1 }
 0x20c   : > { %v1132_v39 = vadd.f32 %v3354_v14, %v4364_v38  ;;  %3405 = vmatprep.mubr.msk.f32.mxu0 %vm1577_vm1, %v5111_v5 }
 0x20d   : > { %v1126_v3 = vpop.f32.mrf.mxu1  ;;  %3406 = vmatmul.mubr.msk.f32.vlgmr.msra.gmra.mxu0 %vm1577_vm1, %v5112_v4 }
 0x20e   : > { %v1127_v10 = vadd.f32 %v1126_v3, %v4367_v42  ;;  %v4461_v11 = vadd.f32 %v4441_v12, %v1132_v39 }
 0x210   : > { %v4464_v13 = vadd.f32 %v4441_v12, %v1127_v10  ;;  %v5114_v38 = vmax.f32 %v4461_v11, 0.0 }
 0x212   : > { %v5113_v9 = vmax.f32 %v4464_v13, 0.0 }
 0x213   : > { %v3357_v14 = vpop.f32.mrf.mxu1 }
 0x214   : > { %v1142_v5 = vadd.f32 %v3357_v14, %v4370_v36  ;;  %3408 = vmatprep.mubr.msk.f32.mxu0 %vm1577_vm1, %v5113_v9 }
 0x215   : > { %v1136_v4 = vpop.f32.mrf.mxu1  ;;  %3409 = vmatmul.mubr.msk.f32.gmra.mxu0 %vm1577_vm1, %v5114_v38 }
 0x216   : > { %v1137_v3 = vadd.f32 %v1136_v4, %v4373_v35  ;;  %v4477_v42 = vadd.f32 %v4441_v12, %v1142_v5 }
 0x218   : > { %v4480_v39 = vadd.f32 %v4441_v12, %v1137_v3  ;;  %v5116_v36 = vmax.f32 %v4477_v42, 0.0 }
 0x21a   : > { %v5115_v10 = vmax.f32 %v4480_v39, 0.0 }
 0x21b   : > { %v3360_v14 = vpop.f32.mrf.mxu1 }
 0x21c   : > { %v1152_v9 = vadd.f32 %v3360_v14, %v4376_v37  ;;  %3411 = vmatprep.mubr.msk.f32.mxu0 %vm1577_vm1, %v5115_v10 }
 0x21d   : > { %v1146_v38 = vpop.f32.mrf.mxu1  ;;  %3412 = vmatmul.mubr.msk.f32.gmra.mxu0 %vm1577_vm1, %v5116_v36 }
 0x21e   : > { %v1147_v4 = vadd.f32 %v1146_v38, %v4379_v43  ;;  %v4493_v5 = vadd.f32 %v4441_v12, %v1152_v9 }
 0x220   : > { %v4496_v35 = vadd.f32 %v4441_v12, %v1147_v4  ;;  %v5119_v37 = vmax.f32 %v4493_v5, 0.0 }
 0x222   : > { %v5118_v3 = vmax.f32 %v4496_v35, 0.0 }
 0x223   : > { %v3363_v14 = vpop.f32.mrf.mxu1 }
 0x224   : > { %v1162_v10 = vadd.f32 %v3363_v14, %v4382_v34  ;;  %3414 = vmatprep.mubr.msk.f32.mxu0 %vm1577_vm1, %v5118_v3 }
 0x225   : > { %v1156_v36 = vpop.f32.mrf.mxu1  ;;  %3415 = vmatmul.mubr.msk.f32.gmra.mxu0 %vm1577_vm1, %v5119_v37 }
 0x226   : > { %v1157_v43 = vadd.f32 %v1156_v36, %v4385_v32  ;;  %v1289_v9 = vadd.f32 %v4441_v12, %v1162_v10 }
 0x228   : > { %v4510_v38 = vadd.f32 %v4441_v12, %v1157_v43  ;;  %v1321_v2 = vmax.f32 %v1289_v9, 0.0 }
 0x22a   : > { %v5121_v4 = vmax.f32 %v4510_v38, 0.0 }
 0x22b   : > { %v3366_v34 = vpop.f32.mrf.mxu1 }
 0x22c   : > { %v1172_v14 = vadd.f32 %v3366_v34, %v4388_v41  ;;  %3417 = vmatprep.mubr.msk.f32.mxu0 %vm1577_vm1, %v5121_v4 }
 0x22d   : > { %v1166_v3 = vpop.f32.mrf.mxu1  ;;  %3418 = vmatmul.mubr.msk.f32.gmra.mxu0 %vm1577_vm1, %v1321_v2 }
 0x22e   : > { %v1167_v32 = vadd.f32 %v1166_v3, %v4391_v0  ;;  %v1291_v10 = vadd.f32 %v4441_v12, %v1172_v14 }
 0x230   : > { %v1290_v36 = vadd.f32 %v4441_v12, %v1167_v32  ;;  %v1323_v37 = vmax.f32 %v1291_v10, 0.0 }
 0x232   : > { %v1322_v43 = vmax.f32 %v1290_v36, 0.0 }
 0x233   : > { %v3369_v1 = vpop.f32.mrf.mxu1 }
 0x234   : > { %v1182_v9 = vadd.f32 %v3369_v1, %v4394_v33  ;;  %3420 = vmatprep.mubr.msk.f32.mxu0 %vm1577_vm1, %v1322_v43 }
 0x235   : > { %v1176_v41 = vpop.f32.mrf.mxu1  ;;  %3421 = vmatmul.mubr.msk.f32.gmra.mxu0 %vm1577_vm1, %v1323_v37 }
 0x236   : > { %v1177_v34 = vadd.f32 %v1176_v41, %v4397_v40  ;;  %v1293_v4 = vadd.f32 %v4441_v12, %v1182_v9 }
 0x238   : > { %v1292_v0 = vadd.f32 %v4441_v12, %v1177_v34  ;;  %v1325_v14 = vmax.f32 %v1293_v4, 0.0  ;;  %v5165_v34 = vmov 0.0  }
 0x23a   : > { %v1324_v3 = vmax.f32 %v1292_v0, 0.0 }
 0x23b   : > { %v3372_v63 = vpop.f32.mrf.mxu1 }
 0x23c   : > { %v1192_v32 = vadd.f32 %v3372_v63, %v4400_v31  ;;  %3423 = vmatprep.mubr.msk.f32.mxu0 %vm1577_vm1, %v1324_v3 }
 0x23d   : > { %v1186_v10 = vpop.f32.mrf.mxu1  ;;  %3424 = vmatmul.mubr.msk.f32.gmra.mxu0 %vm1577_vm1, %v1325_v14 }
 0x23e   : > { %v1295_v1 = vadd.f32 %v4441_v12, %v1192_v32  ;;  %v1187_v33 = vadd.f32 %v1186_v10, %v4403_v30 }
 0x240   : > { %v1327_v36 = vmax.f32 %v1295_v1, 0.0  ;;  %v1294_v40 = vadd.f32 %v4441_v12, %v1187_v33  ;;  %v5167_v33 = vmax.f32 %v4493_v5, 0.0 }
 0x242   : > { %v1326_v9 = vmax.f32 %v1294_v40, 0.0  ;;  %1345 = vmatpush1.msra.mxu1 %v1327_v36  ;;  %v5168_v40 = vmax.f32 %v4496_v35, 0.0 }
 0x243   : > { %v3375_v41 = vpop.f32.mrf.mxu1  ;;  %1346 = vmatprep.subr.mxu1 %v5165_v34 }
 0x244   : > { %v1202_v4 = vadd.f32 %v3375_v41, %v4405_v26  ;;  %1347 = vmatpush1.msra.mxu1 %v1326_v9  ;;  %3426 = vmatprep.mubr.msk.f32.mxu0 %vm1577_vm1, %v1326_v9  ;;  %v5169_v9 = vmax.f32 %v4477_v42, 0.0  ;;  %v5170_v41 = vmax.f32 %v4480_v39, 0.0 }
 0x245   : > { %v1196_v63 = vpop.f32.mrf.mxu1  ;;  %1348 = vmatprep.subr.mxu1 %v5165_v34  ;;  %3427 = vmatmul.mubr.msk.f32.gmra.mxu0 %vm1577_vm1, %v1327_v36 }
 0x246   : > { %v1197_v31 = vadd.f32 %v1196_v63, %v4407_v23  ;;  %1349 = vmatpush1.msra.mxu1 %v1325_v14  ;;  %v4540_v30 = vadd.f32 %v4441_v12, %v1202_v4 }
 0x247   : > { %1350 = vmatprep.subr.mxu1 %v5165_v34 }
 0x248   : > { %v4544_v0 = vadd.f32 %v4441_v12, %v1197_v31  ;;  %1351 = vmatpush1.msra.mxu1 %v1324_v3  ;;  %v1329_v32 = vmax.f32 %v4540_v30, 0.0  ;;  %v3624_v30 = vld [vmem:[%s3860_s28 + $0x38] sm:$0xff] }
 0x249   : > { %1352 = vmatprep.subr.mxu1 %v5165_v34 }
 0x24a   : > { %v1328_v26 = vmax.f32 %v4544_v0, 0.0  ;;  %1353 = vmatpush1.msra.mxu1 %v1323_v37  ;;  %v3627_v0 = vld [vmem:[%s3860_s28 + $0x40] sm:$0xff] }
 0x24b   : > { %v3378_v10 = vpop.f32.mrf.mxu1  ;;  %1354 = vmatprep.subr.mxu1 %v5165_v34 }
 0x24c   : > { %v1212_v23 = vadd.f32 %v3378_v10, %v4409_v29  ;;  %1355 = vmatpush1.msra.mxu1 %v1322_v43  ;;  %3429 = vmatprep.mubr.msk.f32.mxu0 %vm1577_vm1, %v1328_v26  ;;  %v5166_v43 = vmax.f32 %v4510_v38, 0.0  ;;  %v5172_v10 = vmax.f32 %v4464_v13, 0.0 }
 0x24d   : > { %v1206_v14 = vpop.f32.mrf.mxu1  ;;  %1356 = vmatprep.subr.mxu1 %v5165_v34  ;;  %3430 = vmatmul.mubr.msk.f32.gmra.mxu0 %vm1577_vm1, %v1329_v32 }
 0x24e   : > { %v1207_v37 = vadd.f32 %v1206_v14, %v4411_v25  ;;  %1357 = vmatpush1.msra.mxu1 %v1321_v2  ;;  %v4560_v3 = vadd.f32 %v4441_v12, %v1212_v23  ;;  %v5173_v23 = vmax.f32 %v4445_v7, 0.0  ;;  %v5174_v14 = vmax.f32 %v4448_v6, 0.0 }
 0x24f   : > { %1358 = vmatprep.subr.mxu1 %v5165_v34 }
 0x250   : > { %v4564_v29 = vadd.f32 %v4441_v12, %v1207_v37  ;;  %1359 = vmatpush1.msra.mxu1 %v5166_v43  ;;  %v1331_v2 = vmax.f32 %v4560_v3, 0.0  ;;  %v3622_v3 = vld [vmem:[%s3860_s28 + $0x28] sm:$0xff] }
 0x251   : > { %1360 = vmatprep.subr.mxu1 %v5165_v34 }
 0x252   : > { %v1330_v1 = vmax.f32 %v4564_v29, 0.0  ;;  %1361 = vmatpush1.msra.mxu1 %v5167_v33  ;;  %v3623_v29 = vld [vmem:[%s3860_s28 + $0x20] sm:$0xff] }
 0x253   : > { %v3381_v25 = vpop.f32.mrf.mxu1  ;;  %1362 = vmatprep.subr.mxu1 %v5165_v34 }
 0x254   : > { %v1222_v36 = vadd.f32 %v3381_v25, %v4413_v22  ;;  %1363 = vmatpush1.msra.mxu1 %v5168_v40  ;;  %3432 = vmatprep.mubr.msk.f32.mxu0 %vm1577_vm1, %v1330_v1 }
 0x255   : > { %v1216_v38 = vpop.f32.mrf.mxu1  ;;  %1364 = vmatprep.subr.mxu1 %v5165_v34  ;;  %3433 = vmatmul.mubr.msk.f32.gmra.mxu0 %vm1577_vm1, %v1331_v2 }
 0x256   : > { %v1217_v5 = vadd.f32 %v1216_v38, %v4415_v28  ;;  %1365 = vmatpush1.msra.mxu1 %v5169_v9  ;;  %v4588_v22 = vadd.f32 %v4441_v12, %v1222_v36  ;;  %v5171_v28 = vmax.f32 %v4461_v11, 0.0 }
 0x257   : > { %1366 = vmatprep.subr.mxu1 %v5165_v34 }
 0x258   : > { %v4592_v35 = vadd.f32 %v4441_v12, %v1217_v5  ;;  %1367 = vmatpush1.msra.mxu1 %v5170_v41  ;;  %v1333_v42 = vmax.f32 %v4588_v22, 0.0  ;;  %v5192_v22 = vld [vmem:[#allocation25_spill] sm:$0xff] }
 0x259   : > { %1368 = vmatprep.subr.mxu1 %v5165_v34 }
 0x25a   : > { %v1332_v4 = vmax.f32 %v4592_v35, 0.0  ;;  %1369 = vmatpush1.msra.mxu1 %v5171_v28  ;;  %v5193_v35 = vld [vmem:[#allocation26_spill] sm:$0xff] }
 0x25b   : > { %v3384_v63 = vpop.f32.mrf.mxu1  ;;  %1370 = vmatprep.subr.mxu1 %v5165_v34 }
 0x25c   : > { %v1232_v31 = vadd.f32 %v3384_v63, %v4417_v24  ;;  %1371 = vmatpush1.msra.mxu1 %v5172_v10  ;;  %3435 = vmatprep.mubr.msk.f32.mxu0 %vm1577_vm1, %v1332_v4 }
 0x25d   : > { %v1226_v39 = vpop.f32.mrf.mxu1  ;;  %1372 = vmatprep.subr.mxu1 %v5165_v34  ;;  %3436 = vmatmul.mubr.msk.f32.gmra.mxu0 %vm1577_vm1, %v1333_v42 }
 0x25e   : > { %v1227_v11 = vadd.f32 %v1226_v39, %v4419_v21  ;;  %1373 = vmatpush1.msra.mxu1 %v5173_v23  ;;  %v4616_v24 = vadd.f32 %v4441_v12, %v1232_v31 }
 0x25f   : > { %1374 = vmatprep.subr.mxu1 %v5165_v34 }
 0x260   : > { %v4620_v13 = vadd.f32 %v4441_v12, %v1227_v11  ;;  %1375 = vmatpush1.msra.mxu1 %v5174_v14  ;;  %v1335_v21 = vmax.f32 %v4616_v24, 0.0 }
 0x261   : > { %1376 = vmatprep.subr.mxu1 %v5165_v34 }
 0x262   : > { %v1334_v37 = vmax.f32 %v4620_v13, 0.0 }
 0x263   : > { %v3387_v43 = vpop.f32.mrf.mxu1 }
 0x264   : > { %v1242_v7 = vadd.f32 %v3387_v43, %v4421_v27  ;;  %3438 = vmatprep.mubr.msk.f32.mxu0 %vm1577_vm1, %v1334_v37 }
 0x265   : > { %v1236_v33 = vpop.f32.mrf.mxu1  ;;  %3439 = vmatmul.mubr.msk.f32.gmra.mxu0 %vm1577_vm1, %v1335_v21 }
 0x266   : > { %v1237_v25 = vadd.f32 %v1236_v33, %v4423_v8  ;;  %v1305_v36 = vadd.f32 %v4441_v12, %v1242_v7 }
 0x268   : > { %v1304_v6 = vadd.f32 %v4441_v12, %v1237_v25  ;;  %v1337_v38 = vmax.f32 %v1305_v36, 0.0 }
 0x26a   : > { %v1336_v40 = vmax.f32 %v1304_v6, 0.0  ;;  %v5198_v6 = vld [vmem:[#allocation31_spill] sm:$0xff] }
 0x26b   : > { %v3390_v5 = vpop.f32.mrf.mxu1 }
 0x26c   : > { %v1252_v9 = vadd.f32 %v3390_v5, %v4425_v20  ;;  %3441 = vmatprep.mubr.msk.f32.mxu0 %vm1577_vm1, %v1336_v40  ;;  %v5201_v5 = vld [vmem:[#allocation34_spill] sm:$0xff] }
 0x26d   : > { %v1246_v41 = vpop.f32.mrf.mxu1  ;;  %3442 = vmatmul.mubr.msk.f32.gmra.mxu0 %vm1577_vm1, %v1337_v38 }
 0x26e   : > { %v1247_v27 = vadd.f32 %v1246_v41, %v4427_v19  ;;  %v1307_v28 = vadd.f32 %v4441_v12, %v1252_v9  ;;  %v5202_v9 = vld [vmem:[#allocation35_spill] sm:$0xff]  ;;  %v5203_v41 = vld [vmem:[#allocation36_spill] sm:$0xff] }
 0x270   : > { %v1306_v8 = vadd.f32 %v4441_v12, %v1247_v27  ;;  %v1339_v31 = vmax.f32 %v1307_v28, 0.0  ;;  %v5204_v27 = vld [vmem:[#allocation37_spill] sm:$0xff]  ;;  %v5205_v28 = vld [vmem:[#allocation38_spill] sm:$0xff] }
 0x272   : > { %v1338_v63 = vmax.f32 %v1306_v8, 0.0  ;;  %v5206_v8 = vld [vmem:[#allocation39_spill] sm:$0xff] }
 0x273   : > { %v3393_v10 = vpop.f32.mrf.mxu1 }
 0x274   : > { %v1262_v39 = vadd.f32 %v3393_v10, %v4429_v18  ;;  %3444 = vmatprep.mubr.msk.f32.mxu0 %vm1577_vm1, %v1338_v63  ;;  %v5209_v10 = vld [vmem:[#allocation42_spill] sm:$0xff] }
 0x275   : > { %v1256_v11 = vpop.f32.mrf.mxu1  ;;  %3445 = vmatmul.mubr.msk.f32.gmra.mxu0 %vm1577_vm1, %v1339_v31 }
 0x276   : > { %v1257_v20 = vadd.f32 %v1256_v11, %v4431_v17  ;;  %v1309_v23 = vadd.f32 %v4441_v12, %v1262_v39 }
 0x278   : > { %v1308_v19 = vadd.f32 %v4441_v12, %v1257_v20  ;;  %v1341_v13 = vmax.f32 %v1309_v23, 0.0 }
 0x27a   : > { %v1340_v24 = vmax.f32 %v1308_v19, 0.0 }
 0x27b   : > { %v3396_v14 = vpop.f32.mrf.mxu1 }
 0x27c   : > { %v1272_v43 = vadd.f32 %v3396_v14, %v4433_v16  ;;  %3447 = vmatprep.mubr.msk.f32.mxu0 %vm1577_vm1, %v1340_v24  ;;  %v3621_v16 = vld [vmem:[%s3860_s28 + $0x10] sm:$0xff] }
 0x27d   : > { %v1266_v7 = vpop.f32.mrf.mxu1  ;;  %3448 = vmatmul.mubr.msk.f32.gmra.mxu0 %vm1577_vm1, %v1341_v13 }
 0x27e   : > { %v1311_v18 = vadd.f32 %v4441_v12, %v1272_v43  ;;  %v1267_v33 = vadd.f32 %v1266_v7, %v4435_v15  ;;  %v3620_v15 = vld [vmem:[%s3860_s28 + $0x18] sm:$0xff] }
 0x280   : > { %v1343_v25 = vmax.f32 %v1311_v18, 0.0  ;;  %v1310_v17 = vadd.f32 %v4441_v12, %v1267_v33  ;;  %v3619_v12 = vld [vmem:[%s3860_s28] sm:$0xff] }
 0x282   : > { %v1342_v36 = vmax.f32 %v1310_v17, 0.0  ;;  %1377 = vmatpush2.msra.mxu1 %v1343_v25 }
 0x283   : > { %1378 = vmatprep.subr.mxu1 %v5165_v34 }
 0x284   : > { %1379 = vmatpush2.msra.mxu1 %v1342_v36  ;;  %3450 = vmatprep.mubr.msk.f32.mxu0 %vm1577_vm1, %v1342_v36 }
 0x285   : > { %1380 = vmatprep.subr.mxu1 %v5165_v34  ;;  %3451 = vmatmul.mubr.msk.f32.gmra.mxu0 %vm1577_vm1, %v1343_v25 }
 0x286   : > { %1381 = vmatpush2.msra.mxu1 %v1341_v13 }
 0x287   : > { %1382 = vmatprep.subr.mxu1 %v5165_v34 }
 0x288   : > { %1383 = vmatpush2.msra.mxu1 %v1340_v24 }
 0x289   : > { %1384 = vmatprep.subr.mxu1 %v5165_v34 }
 0x28a   : > { %1385 = vmatpush2.msra.mxu1 %v1339_v31  ;;  %v5208_v31 = vld [vmem:[#allocation41_spill] sm:$0xff] }
 0x28b   : > { %1386 = vmatprep.subr.mxu1 %v5165_v34 }
 0x28c   : > { %1387 = vmatpush2.msra.mxu1 %v1338_v63  ;;  %v5207_v63 = vld [vmem:[#allocation40_spill] sm:$0xff] }
 0x28d   : > { %1388 = vmatprep.subr.mxu1 %v5165_v34 }
 0x28e   : > { %1389 = vmatpush2.msra.mxu1 %v1337_v38  ;;  %v5200_v38 = vld [vmem:[#allocation33_spill] sm:$0xff] }
 0x28f   : > { %1390 = vmatprep.subr.mxu1 %v5165_v34 }
 0x290   : > { %1391 = vmatpush2.msra.mxu1 %v1336_v40  ;;  %v5199_v40 = vld [vmem:[#allocation32_spill] sm:$0xff] }
 0x291   : > { %1392 = vmatprep.subr.mxu1 %v5165_v34 }
 0x292   : > { %1393 = vmatpush2.msra.mxu1 %v1335_v21  ;;  %v5197_v21 = vld [vmem:[#allocation30_spill] sm:$0xff] }
 0x293   : > { %1394 = vmatprep.subr.mxu1 %v5165_v34 }
 0x294   : > { %1395 = vmatpush2.msra.mxu1 %v1334_v37  ;;  %v5196_v37 = vld [vmem:[#allocation29_spill] sm:$0xff] }
 0x295   : > { %1396 = vmatprep.subr.mxu1 %v5165_v34 }
 0x296   : > { %1397 = vmatpush2.msra.mxu1 %v1333_v42  ;;  %v5195_v42 = vld [vmem:[#allocation28_spill] sm:$0xff] }
 0x297   : > { %1398 = vmatprep.subr.mxu1 %v5165_v34 }
 0x298   : > { %1399 = vmatpush2.msra.mxu1 %v1332_v4  ;;  %v5194_v4 = vld [vmem:[#allocation27_spill] sm:$0xff] }
 0x299   : > { %1400 = vmatprep.subr.mxu1 %v5165_v34 }
 0x29a   : > { %1401 = vmatpush2.msra.mxu1 %v1331_v2  ;;  %v5191_v2 = vld [vmem:[#allocation24_spill] sm:$0xff] }
 0x29b   : > { %1402 = vmatprep.subr.mxu1 %v5165_v34 }
 0x29c   : > { %1403 = vmatpush2.msra.mxu1 %v1330_v1  ;;  %v3626_v1 = vld [vmem:[%s3860_s28 + $0x48] sm:$0xff] }
 0x29d   : > { %1404 = vmatprep.subr.mxu1 %v5165_v34 }
 0x29e   : > { %1405 = vmatpush2.msra.mxu1 %v1329_v32  ;;  %v3625_v32 = vld [vmem:[%s3860_s28 + $0x30] sm:$0xff]  ;;  %s3656_s28 = scalar_lea.vmem %s5029_s26, 128 }
 0x29f   : > { %1406 = vmatprep.subr.mxu1 %v5165_v34  ;;  %p3657_p12 = scmp.ne.s32.totalorder %s5029_s26, %s3656_s28  ;;  %p3664_p8 = scmp.lt.s32.totalorder %s3662_s22, %s3656_s28 }
 0x2a0   : > { %1407 = vmatpush2.msra.mxu1 %v1328_v26  ;;  %v5190_v26 = vld [vmem:[#allocation23_spill] sm:$0xff] }
 0x2a1   : > { %1409 = vmatmul.mubr.f32.vlgmr.msra.gmra.mxu1 %v3619_v12  ;;  %p3658_p4 = pnand %p3657_p12, %p5235_p13  ;;  %p3665_p10 = por %p3664_p8, %p3663_p7 }
 0x2a2   : > { %1413 = vmatprep.mubr.f32.mxu1 %v3620_v15 }
 0x2a3   : > { %p3659_p5 = pneg %p3658_p4 }
 0x2a5   : > { %1414 = vmatmul.mubr.f32.gmra.mxu1 %v3621_v16  ;;  %p3666_p0 = pnand %p3665_p10, %p3659_p5 }
 0x2a6   : > { %1418 = vmatprep.mubr.f32.mxu1 %v3622_v3 }
 0x2a9   : > { %1419 = vmatmul.mubr.f32.gmra.mxu1 %v3623_v29 }
 0x2aa   : > { %1423 = vmatprep.mubr.f32.mxu1 %v3624_v30 }
 0x2ad   : > { %1424 = vmatmul.mubr.f32.gmra.mxu1 %v3625_v32 }
 0x2ae   : > { %1428 = vmatprep.mubr.f32.mxu1 %v3626_v1 }
 0x2b1   : > { %1429 = vmatmul.mubr.f32.gmra.mxu1 %v3627_v0 }
 0x2b2   : > { %1433 = vmatprep.mubr.f32.mxu1 %v4064_v44  ;;  %v1572_v44 = vld [vmem:[%s5073_s4 + $0x30] sm:$0xff] }
 0x2b3   : > { %3453 = vmatprep.subr.mxu0 %v1572_v44 }
 0x2b4   : > { %3454 = vmatpush3.msra.mxu0 %v1572_v44 }
 0x2b5   : > { %1434 = vmatmul.mubr.f32.gmra.mxu1 %v4070_v45  ;;  %v1571_v45 = vld [vmem:[%s5073_s4 + $0x28] sm:$0xff] }
 0x2b6   : > { %1438 = vmatprep.mubr.f32.mxu1 %v4075_v46  ;;  %3455 = vmatprep.subr.mxu0 %v1571_v45  ;;  %v5175_v46 = vld [vmem:[#allocation8_spill] sm:$0xff] }
 0x2b7   : > { %3456 = vmatpush3.msra.mxu0 %v1571_v45 }
 0x2b9   : > { %1439 = vmatmul.mubr.f32.gmra.mxu1 %v4082_v47  ;;  %v5176_v47 = vld [vmem:[#allocation9_spill] sm:$0xff] }
 0x2ba   : > { %1443 = vmatprep.mubr.f32.mxu1 %v4087_v48  ;;  %v5177_v48 = vld [vmem:[#allocation10_spill] sm:$0xff] }
 0x2bd   : > { %1444 = vmatmul.mubr.f32.gmra.mxu1 %v4094_v49  ;;  %v5178_v49 = vld [vmem:[#allocation11_spill] sm:$0xff] }
 0x2be   : > { %1448 = vmatprep.mubr.f32.mxu1 %v4099_v50  ;;  %v5179_v50 = vld [vmem:[#allocation12_spill] sm:$0xff] }
 0x2c1   : > { %1449 = vmatmul.mubr.f32.gmra.mxu1 %v4106_v51  ;;  %v1570_v51 = vld [vmem:[%s5073_s4 + $0x20] sm:$0xff] }
 0x2c2   : > { %1453 = vmatprep.mubr.f32.mxu1 %v4110_v52  ;;  %v5180_v52 = vld [vmem:[#allocation13_spill] sm:$0xff]  ;;  %3457 = vmatprep.subr.mxu0 %v1570_v51 }
 0x2c3   : > { %3458 = vmatpush3.msra.mxu0 %v1570_v51 }
 0x2c5   : > { %1454 = vmatmul.mubr.f32.gmra.mxu1 %v4117_v53  ;;  %v1569_v53 = vld [vmem:[%s5073_s4 + $0x18] sm:$0xff] }
 0x2c6   : > { %1458 = vmatprep.mubr.f32.mxu1 %v4122_v54  ;;  %3459 = vmatprep.subr.mxu0 %v1569_v53  ;;  %v5181_v54 = vld [vmem:[#allocation14_spill] sm:$0xff] }
 0x2c7   : > { %3460 = vmatpush3.msra.mxu0 %v1569_v53 }
 0x2c9   : > { %1459 = vmatmul.mubr.f32.gmra.mxu1 %v4129_v55  ;;  %v5182_v55 = vld [vmem:[#allocation15_spill] sm:$0xff] }
 0x2ca   : > { %1463 = vmatprep.mubr.f32.mxu1 %v4134_v56  ;;  %v5183_v56 = vld [vmem:[#allocation16_spill] sm:$0xff] }
 0x2cd   : > { %1464 = vmatmul.mubr.f32.gmra.mxu1 %v4141_v57  ;;  %v5184_v57 = vld [vmem:[#allocation17_spill] sm:$0xff] }
 0x2ce   : > { %1468 = vmatprep.mubr.f32.mxu1 %v4146_v58  ;;  %v5185_v58 = vld [vmem:[#allocation18_spill] sm:$0xff] }
 0x2d1   : > { %1469 = vmatmul.mubr.f32.gmra.mxu1 %v4153_v59  ;;  %v5186_v59 = vld [vmem:[#allocation19_spill] sm:$0xff] }
 0x2d2   : > { %1473 = vmatprep.mubr.f32.mxu1 %v4158_v60  ;;  %v5187_v60 = vld [vmem:[#allocation20_spill] sm:$0xff] }
 0x2d5   : > { %1474 = vmatmul.mubr.f32.gmra.mxu1 %v4165_v61  ;;  %v5188_v61 = vld [vmem:[#allocation21_spill] sm:$0xff] }
 0x2d6   : > { %1478 = vmatprep.mubr.f32.mxu1 %v4170_v62  ;;  %v5189_v62 = vld [vmem:[#allocation22_spill] sm:$0xff] }
 0x2d9   : > { %1479 = vmatmul.mubr.f32.gmra.mxu1 %v5175_v46 }
 0x2da   : > { %1483 = vmatprep.mubr.f32.mxu1 %v5176_v47 }
 0x2dd   : > { %1484 = vmatmul.mubr.f32.gmra.mxu1 %v5177_v48 }
 0x2de   : > { %1488 = vmatprep.mubr.f32.mxu1 %v5178_v49 }
 0x2e1   : > { %1489 = vmatmul.mubr.f32.gmra.mxu1 %v5179_v50 }
 0x2e2   : > { %1493 = vmatprep.mubr.f32.mxu1 %v5180_v52 }
 0x2e5   : > { %1494 = vmatmul.mubr.f32.gmra.mxu1 %v5181_v54 }
 0x2e6   : > { %1498 = vmatprep.mubr.f32.mxu1 %v5182_v55 }
 0x2e9   : > { %1499 = vmatmul.mubr.f32.gmra.mxu1 %v5183_v56 }
 0x2ea   : > { %1503 = vmatprep.mubr.f32.mxu1 %v5184_v57 }
 0x2ed   : > { %1504 = vmatmul.mubr.f32.gmra.mxu1 %v5185_v58 }
 0x2ee   : > { %1508 = vmatprep.mubr.f32.mxu1 %v5186_v59 }
 0x2f1   : > { %1509 = vmatmul.mubr.f32.gmra.mxu1 %v5187_v60 }
 0x2f2   : > { %1513 = vmatprep.mubr.f32.mxu1 %v5188_v61 }
 0x2f5   : > { %1514 = vmatmul.mubr.f32.gmra.mxu1 %v5189_v62 }
 0x2f6   : > { %1518 = vmatprep.mubr.f32.mxu1 %v5190_v26 }
 0x2f9   : > { %1519 = vmatmul.mubr.f32.gmra.mxu1 %v5191_v2 }
 0x2fa   : > { %1523 = vmatprep.mubr.f32.mxu1 %v5192_v22 }
 0x2fd   : > { %1524 = vmatmul.mubr.f32.gmra.mxu1 %v5193_v35 }
 0x2fe   : > { %1528 = vmatprep.mubr.f32.mxu1 %v5194_v4 }
 0x301   : > { %1529 = vmatmul.mubr.f32.gmra.mxu1 %v5195_v42 }
 0x302   : > { %1533 = vmatprep.mubr.f32.mxu1 %v5196_v37 }
 0x305   : > { %1534 = vmatmul.mubr.f32.gmra.mxu1 %v5197_v21 }
 0x306   : > { %1538 = vmatprep.mubr.f32.mxu1 %v5198_v6 }
 0x309   : > { %1539 = vmatmul.mubr.f32.gmra.mxu1 %v5199_v40 }
 0x30a   : > { %1543 = vmatprep.mubr.f32.mxu1 %v5200_v38 }
 0x30d   : > { %1544 = vmatmul.mubr.f32.gmra.mxu1 %v5201_v5 }
 0x30e   : > { %1548 = vmatprep.mubr.f32.mxu1 %v5202_v9 }
 0x311   : > { %1549 = vmatmul.mubr.f32.gmra.mxu1 %v5203_v41 }
 0x312   : > { %1553 = vmatprep.mubr.f32.mxu1 %v5204_v27 }
 0x315   : > { %1554 = vmatmul.mubr.f32.gmra.mxu1 %v5205_v28 }
 0x316   : > { %1558 = vmatprep.mubr.f32.mxu1 %v5206_v8 }
 0x319   : > { %1559 = vmatmul.mubr.f32.gmra.mxu1 %v5207_v63 }
 0x31a   : > { %1563 = vmatprep.mubr.f32.mxu1 %v5208_v31 }
 0x31d   : > { %1564 = vmatmul.mubr.f32.gmra.mxu1 %v5209_v10 }
 0x361   : > { %v1410_v39 = vpop.f32.mrf.mxu1 }
 0x362   : > { %3461 = vmatprep.mubr.msk.f32.mxu0 %vm1577_vm1, %v1410_v39 }
 0x363   : > { %v1412_v11 = vpop.f32.mrf.mxu1 }
 0x364   : > { %v4787_v11 = vpop.f32.mrf.mxu0 }
 0x365   : > { %v1415_v20 = vpop.f32.mrf.mxu1  ;;  %5210 = vst [vmem:[#allocation8_spill] sm:$0xff] %v4787_v11 }
 0x366   : > { %3462 = vmatmul.mubr.msk.f32.vlgmr.msra.gmra.mxu0 %vm1577_vm1, %v1415_v20  ;;  %v4789_v20 = vpop.f32.mrf.mxu0 }
 0x367   : > { %v1417_v23 = vpop.f32.mrf.mxu1  ;;  %5211 = vst [vmem:[#allocation9_spill] sm:$0xff] %v4789_v20  ;;  %v4871_v20 = vld [vmem:[%s5073_s4 + $0x58] ss:$0 sm:$0xff] }
 0x368   : > { %v4791_v23 = vpop.f32.mrf.mxu0 }
 0x369   : > { %v1420_v19 = vpop.f32.mrf.mxu1 }
 0x36a   : > { %3464 = vmatprep.mubr.msk.f32.mxu0 %vm1577_vm1, %v1420_v19  ;;  %v4793_v19 = vpop.f32.mrf.mxu0 }
 0x36b   : > { %v1422_v24 = vpop.f32.mrf.mxu1  ;;  %5212 = vst [vmem:[#allocation10_spill] sm:$0xff] %v4793_v19 }
 0x36c   : > { %v4795_v24 = vpop.f32.mrf.mxu0 }
 0x36d   : > { %v1425_v13 = vpop.f32.mrf.mxu1 }
 0x36e   : > { %3465 = vmatmul.mubr.msk.f32.gmra.mxu0 %vm1577_vm1, %v1425_v13  ;;  %v4797_v13 = vpop.f32.mrf.mxu0 }
 0x36f   : > { %v1427_v14 = vpop.f32.mrf.mxu1 }
 0x370   : > { %v4799_v14 = vpop.f32.mrf.mxu0 }
 0x371   : > { %v1430_v43 = vpop.f32.mrf.mxu1 }
 0x372   : > { %3467 = vmatprep.mubr.msk.f32.mxu0 %vm1577_vm1, %v1430_v43  ;;  %v4801_v43 = vpop.f32.mrf.mxu0 }
 0x373   : > { %v1432_v7 = vpop.f32.mrf.mxu1 }
 0x374   : > { %v4803_v7 = vpop.f32.mrf.mxu0 }
 0x375   : > { %v1435_v18 = vpop.f32.mrf.mxu1 }
 0x376   : > { %3468 = vmatmul.mubr.msk.f32.gmra.mxu0 %vm1577_vm1, %v1435_v18  ;;  %v4805_v18 = vpop.f32.mrf.mxu0 }
 0x377   : > { %v1437_v33 = vpop.f32.mrf.mxu1 }
 0x378   : > { %v4807_v33 = vpop.f32.mrf.mxu0 }
 0x379   : > { %v1440_v25 = vpop.f32.mrf.mxu1 }
 0x37a   : > { %3470 = vmatprep.mubr.msk.f32.mxu0 %vm1577_vm1, %v1440_v25  ;;  %v4809_v25 = vpop.f32.mrf.mxu0 }
 0x37b   : > { %v1442_v17 = vpop.f32.mrf.mxu1 }
 0x37c   : > { %v3425_v17 = vpop.f32.mrf.mxu0 }
 0x37d   : > { %v1445_v36 = vpop.f32.mrf.mxu1 }
 0x37e   : > { %3471 = vmatmul.mubr.msk.f32.gmra.mxu0 %vm1577_vm1, %v1445_v36  ;;  %v4811_v36 = vpop.f32.mrf.mxu0 }
 0x37f   : > { %v1447_v12 = vpop.f32.mrf.mxu1 }
 0x380   : > { %v3428_v12 = vpop.f32.mrf.mxu0 }
 0x381   : > { %v1450_v15 = vpop.f32.mrf.mxu1 }
 0x382   : > { %3473 = vmatprep.mubr.msk.f32.mxu0 %vm1577_vm1, %v1450_v15  ;;  %v1810_v15 = vpop.f32.mrf.mxu0 }
 0x383   : > { %v1452_v16 = vpop.f32.mrf.mxu1 }
 0x384   : > { %v4813_v16 = vpop.f32.mrf.mxu0 }
 0x385   : > { %v1455_v3 = vpop.f32.mrf.mxu1  ;;  %5213 = vst [vmem:[#allocation11_spill] sm:$0xff] %v4813_v16 }
 0x386   : > { %3474 = vmatmul.mubr.msk.f32.gmra.mxu0 %vm1577_vm1, %v1455_v3  ;;  %v4815_v3 = vpop.f32.mrf.mxu0 }
 0x387   : > { %v1457_v29 = vpop.f32.mrf.mxu1  ;;  %5214 = vst [vmem:[#allocation12_spill] sm:$0xff] %v4815_v3 }
 0x388   : > { %v4817_v29 = vpop.f32.mrf.mxu0 }
 0x389   : > { %v1460_v30 = vpop.f32.mrf.mxu1 }
 0x38a   : > { %3476 = vmatprep.mubr.msk.f32.mxu0 %vm1577_vm1, %v1460_v30  ;;  %v4819_v30 = vpop.f32.mrf.mxu0 }
 0x38b   : > { %v1462_v32 = vpop.f32.mrf.mxu1  ;;  %5215 = vst [vmem:[#allocation13_spill] sm:$0xff] %v4819_v30 }
 0x38c   : > { %v4821_v32 = vpop.f32.mrf.mxu0 }
 0x38d   : > { %v1465_v1 = vpop.f32.mrf.mxu1 }
 0x38e   : > { %3477 = vmatmul.mubr.msk.f32.gmra.mxu0 %vm1577_vm1, %v1465_v1  ;;  %v4823_v1 = vpop.f32.mrf.mxu0 }
 0x38f   : > { %v1467_v0 = vpop.f32.mrf.mxu1 }
 0x390   : > { %v4825_v0 = vpop.f32.mrf.mxu0 }
 0x391   : > { %v1470_v44 = vpop.f32.mrf.mxu1 }
 0x392   : > { %3479 = vmatprep.mubr.msk.f32.mxu0 %vm1577_vm1, %v1470_v44  ;;  %v4827_v44 = vpop.f32.mrf.mxu0 }
 0x393   : > { %v1472_v45 = vpop.f32.mrf.mxu1 }
 0x394   : > { %v4829_v45 = vpop.f32.mrf.mxu0 }
 0x395   : > { %v1475_v46 = vpop.f32.mrf.mxu1 }
 0x396   : > { %3480 = vmatmul.mubr.msk.f32.gmra.mxu0 %vm1577_vm1, %v1475_v46  ;;  %v4831_v46 = vpop.f32.mrf.mxu0 }
 0x397   : > { %v1477_v47 = vpop.f32.mrf.mxu1 }
 0x398   : > { %v3446_v47 = vpop.f32.mrf.mxu0 }
 0x399   : > { %v1480_v48 = vpop.f32.mrf.mxu1 }
 0x39a   : > { %3482 = vmatprep.mubr.msk.f32.mxu0 %vm1577_vm1, %v1480_v48  ;;  %v1870_v48 = vpop.f32.mrf.mxu0 }
 0x39b   : > { %v1482_v49 = vpop.f32.mrf.mxu1 }
 0x39c   : > { %v3449_v49 = vpop.f32.mrf.mxu0 }
 0x39d   : > { %v1485_v50 = vpop.f32.mrf.mxu1 }
 0x39e   : > { %3483 = vmatmul.mubr.msk.f32.gmra.mxu0 %vm1577_vm1, %v1485_v50  ;;  %v1880_v50 = vpop.f32.mrf.mxu0 }
 0x39f   : > { %v1487_v51 = vpop.f32.mrf.mxu1 }
 0x3a0   : > { %v3452_v51 = vpop.f32.mrf.mxu0 }
 0x3a1   : > { %v1490_v52 = vpop.f32.mrf.mxu1 }
 0x3a2   : > { %3485 = vmatprep.mubr.msk.f32.mxu0 %vm1577_vm1, %v1490_v52  ;;  %v1890_v52 = vpop.f32.mrf.mxu0 }
 0x3a3   : > { %v1492_v53 = vpop.f32.mrf.mxu1 }
 0x3a4   : > { %v397_v53 = vld [vmem:[%s4837_s16 + $0x8] sm:$0xff] }
 0x3a5   : > { %v1495_v54 = vpop.f32.mrf.mxu1  ;;  %2353 = vmatprep.mubr.f32.mxu1 %v397_v53 }
 0x3a6   : > { %3486 = vmatmul.mubr.msk.f32.gmra.mxu0 %vm1577_vm1, %v1495_v54 }
 0x3a7   : > { %v1497_v55 = vpop.f32.mrf.mxu1 }
 0x3a9   : > { %v1500_v56 = vpop.f32.mrf.mxu1 }
 0x3aa   : > { %3488 = vmatprep.mubr.msk.f32.mxu0 %vm1577_vm1, %v1500_v56 }
 0x3ab   : > { %v1502_v57 = vpop.f32.mrf.mxu1 }
 0x3ad   : > { %v1505_v58 = vpop.f32.mrf.mxu1 }
 0x3ae   : > { %3489 = vmatmul.mubr.msk.f32.gmra.mxu0 %vm1577_vm1, %v1505_v58 }
 0x3af   : > { %v1507_v59 = vpop.f32.mrf.mxu1 }
 0x3b1   : > { %v1510_v60 = vpop.f32.mrf.mxu1 }
 0x3b2   : > { %3491 = vmatprep.mubr.msk.f32.mxu0 %vm1577_vm1, %v1510_v60 }
 0x3b3   : > { %v1512_v61 = vpop.f32.mrf.mxu1 }
 0x3b5   : > { %v1515_v62 = vpop.f32.mrf.mxu1 }
 0x3b6   : > { %3492 = vmatmul.mubr.msk.f32.gmra.mxu0 %vm1577_vm1, %v1515_v62 }
 0x3b7   : > { %v1517_v26 = vpop.f32.mrf.mxu1 }
 0x3b9   : > { %v1520_v2 = vpop.f32.mrf.mxu1 }
 0x3ba   : > { %3494 = vmatprep.mubr.msk.f32.mxu0 %vm1577_vm1, %v1520_v2 }
 0x3bb   : > { %v1522_v22 = vpop.f32.mrf.mxu1 }
 0x3bd   : > { %v1525_v35 = vpop.f32.mrf.mxu1 }
 0x3be   : > { %3495 = vmatmul.mubr.msk.f32.gmra.mxu0 %vm1577_vm1, %v1525_v35 }
 0x3bf   : > { %v1527_v4 = vpop.f32.mrf.mxu1 }
 0x3c1   : > { %v1530_v42 = vpop.f32.mrf.mxu1 }
 0x3c2   : > { %3497 = vmatprep.mubr.msk.f32.mxu0 %vm1577_vm1, %v1530_v42 }
 0x3c3   : > { %v1532_v37 = vpop.f32.mrf.mxu1 }
 0x3c5   : > { %v1535_v21 = vpop.f32.mrf.mxu1 }
 0x3c6   : > { %3498 = vmatmul.mubr.msk.f32.gmra.mxu0 %vm1577_vm1, %v1535_v21 }
 0x3c7   : > { %v1537_v6 = vpop.f32.mrf.mxu1 }
 0x3c9   : > { %v1540_v40 = vpop.f32.mrf.mxu1 }
 0x3ca   : > { %3500 = vmatprep.mubr.msk.f32.mxu0 %vm1577_vm1, %v1540_v40 }
 0x3cb   : > { %v1542_v38 = vpop.f32.mrf.mxu1 }
 0x3cd   : > { %v1545_v5 = vpop.f32.mrf.mxu1 }
 0x3ce   : > { %3501 = vmatmul.mubr.msk.f32.gmra.mxu0 %vm1577_vm1, %v1545_v5 }
 0x3cf   : > { %v1547_v9 = vpop.f32.mrf.mxu1 }
 0x3d1   : > { %v1550_v41 = vpop.f32.mrf.mxu1 }
 0x3d2   : > { %3503 = vmatprep.mubr.msk.f32.mxu0 %vm1577_vm1, %v1550_v41 }
 0x3d3   : > { %v1552_v27 = vpop.f32.mrf.mxu1 }
 0x3d5   : > { %v1555_v28 = vpop.f32.mrf.mxu1 }
 0x3d6   : > { %3504 = vmatmul.mubr.msk.f32.gmra.mxu0 %vm1577_vm1, %v1555_v28 }
 0x3d7   : > { %v1557_v8 = vpop.f32.mrf.mxu1 }
 0x3d9   : > { %v1560_v63 = vpop.f32.mrf.mxu1 }
 0x3da   : > { %3506 = vmatprep.mubr.msk.f32.mxu0 %vm1577_vm1, %v1560_v63 }
 0x3db   : > { %v1562_v31 = vpop.f32.mrf.mxu1 }
 0x3dd   : > { %v1565_v10 = vpop.f32.mrf.mxu1 }
 0x3de   : > { %3507 = vmatmul.mubr.msk.f32.gmra.mxu0 %vm1577_vm1, %v1565_v10 }
 0x3df   : > { %v1567_v39 = vpop.f32.mrf.mxu1 }
 0x426   : > { %v4840_v54 = vpop.f32.mrf.mxu0 }
 0x427   : > { %5216 = vst [vmem:[#allocation14_spill] sm:$0xff] %v4840_v54 }
 0x428   : > { %v4842_v55 = vpop.f32.mrf.mxu0 }
 0x429   : > { %5217 = vst [vmem:[#allocation15_spill] sm:$0xff] %v4842_v55 }
 0x42e   : > { %v4844_v56 = vpop.f32.mrf.mxu0 }
 0x430   : > { %v4846_v57 = vpop.f32.mrf.mxu0 }
 0x431   : > { %5218 = vst [vmem:[#allocation16_spill] sm:$0xff] %v4846_v57 }
 0x436   : > { %v4848_v58 = vpop.f32.mrf.mxu0 }
 0x438   : > { %v4850_v59 = vpop.f32.mrf.mxu0 }
 0x43e   : > { %v4852_v60 = vpop.f32.mrf.mxu0 }
 0x440   : > { %v4854_v61 = vpop.f32.mrf.mxu0 }
 0x446   : > { %v3475_v62 = vpop.f32.mrf.mxu0 }
 0x448   : > { %v2101_v26 = vpop.f32.mrf.mxu0 }
 0x44e   : > { %v3478_v2 = vpop.f32.mrf.mxu0 }
 0x450   : > { %v2111_v22 = vpop.f32.mrf.mxu0 }
 0x456   : > { %v3481_v35 = vpop.f32.mrf.mxu0 }
 0x457   : > { %v2127_v54 = vadd.f32 %v3481_v35, %v3425_v17  ;;  %v2097_v35 = vadd.f32 %v4852_v60, %v4799_v14 }
 0x458   : > { %v2121_v4 = vpop.f32.mrf.mxu0 }
 0x459   : > { %v2238_v17 = vadd.f32 %v4871_v20, %v2127_v54  ;;  %v2102_v54 = vadd.f32 %v2101_v26, %v4805_v18 }
 0x45e   : > { %v3484_v42 = vpop.f32.mrf.mxu0 }
 0x45f   : > { %v2137_v39 = vadd.f32 %v3484_v42, %v3428_v12  ;;  %v2122_v12 = vadd.f32 %v2121_v4, %v4811_v36  ;;  %v2112_v36 = vadd.f32 %v2111_v22, %v4809_v25 }
 0x460   : > { %v2131_v37 = vpop.f32.mrf.mxu0 }
 0x461   : > { %v2132_v34 = vadd.f32 %v2131_v37, %v1810_v15  ;;  %v2240_v11 = vadd.f32 %v4871_v20, %v2137_v39  ;;  %v5222_v39 = vld [vmem:[#allocation13_spill] sm:$0xff] }
 0x463   : > { %v2239_v15 = vadd.f32 %v4871_v20, %v2132_v34  ;;  %v2237_v34 = vadd.f32 %v4871_v20, %v2122_v12 }
 0x466   : > { %v4856_v21 = vpop.f32.mrf.mxu0 }
 0x467   : > { %5219 = vst [vmem:[#allocation17_spill] sm:$0xff] %v4856_v21 }
 0x468   : > { %v4858_v6 = vpop.f32.mrf.mxu0 }
 0x469   : > { %5220 = vst [vmem:[#allocation18_spill] sm:$0xff] %v4858_v6 }
 0x46e   : > { %v4860_v40 = vpop.f32.mrf.mxu0 }
 0x470   : > { %v4862_v38 = vpop.f32.mrf.mxu0 }
 0x471   : > { %5221 = vst [vmem:[#allocation19_spill] sm:$0xff] %v4862_v38 }
 0x476   : > { %v4864_v5 = vpop.f32.mrf.mxu0 }
 0x477   : > { %v2167_v14 = vadd.f32 %v4864_v5, %v4821_v32  ;;  %v2082_v32 = vadd.f32 %v4850_v59, %v4797_v13 }
 0x478   : > { %v4866_v9 = vpop.f32.mrf.mxu0  ;;  %v5223_v13 = vld [vmem:[#allocation19_spill] sm:$0xff] }
 0x479   : > { %v2152_v59 = vadd.f32 %v5223_v13, %v5222_v39 }
 0x47e   : > { %v3496_v41 = vpop.f32.mrf.mxu0 }
 0x47f   : > { %v2177_v22 = vadd.f32 %v3496_v41, %v4825_v0  ;;  %v2092_v0 = vadd.f32 %v4854_v61, %v4801_v43  ;;  %v2162_v43 = vadd.f32 %v4866_v9, %v4823_v1  ;;  %v2077_v1 = vadd.f32 %v4844_v56, %v4791_v23  ;;  %v5227_v23 = vld [vmem:[#allocation17_spill] sm:$0xff] }
 0x480   : > { %v2171_v27 = vpop.f32.mrf.mxu0 }
 0x481   : > { %v2248_v60 = vadd.f32 %v4871_v20, %v2177_v22  ;;  %v2231_v5 = vadd.f32 %v4871_v20, %v2092_v0  ;;  %v396_v0 = vld [vmem:[%s4837_s16] sm:$0xff] }
 0x486   : > { %v3499_v28 = vpop.f32.mrf.mxu0 }
 0x488   : > { %v2181_v8 = vpop.f32.mrf.mxu0 }
 0x48e   : > { %v3502_v63 = vpop.f32.mrf.mxu0 }
 0x48f   : > { %v2197_v42 = vadd.f32 %v3502_v63, %v3446_v47  ;;  %v2271_v47 = vmax.f32 %v2239_v15, 0.0  ;;  %v5224_v15 = vld [vmem:[#allocation10_spill] sm:$0xff] }
 0x490   : > { %v2191_v31 = vpop.f32.mrf.mxu0 }
 0x496   : > { %v3505_v10 = vpop.f32.mrf.mxu0 }
 0x497   : > { %v2207_v6 = vadd.f32 %v3505_v10, %v3449_v49  ;;  %v2117_v49 = vadd.f32 %v3478_v2, %v4807_v33  ;;  %v2107_v33 = vadd.f32 %v3475_v62, %v4803_v7  ;;  %v2269_v2 = vmax.f32 %v2237_v34, 0.0 }
 0x498   : > { %v2201_v53 = vpop.f32.mrf.mxu0 }
 0x499   : > { %v2202_v16 = vadd.f32 %v2201_v53, %v1880_v50  ;;  %v2254_v37 = vadd.f32 %v4871_v20, %v2207_v6  ;;  %v2233_v6 = vadd.f32 %v4871_v20, %v2102_v54  ;;  %v2245_v53 = vadd.f32 %v4871_v20, %v2162_v43  ;;  %v2374_v43 = vld [vmem:[%s5073_s4 + $0x60] sm:$0xff] }
 0x49b   : > { %v2253_v50 = vadd.f32 %v4871_v20, %v2202_v16  ;;  %v2182_v16 = vadd.f32 %v2181_v8, %v4831_v46  ;;  %v2234_v46 = vadd.f32 %v4871_v20, %v2107_v33  ;;  %v2265_v63 = vmax.f32 %v2233_v6, 0.0  ;;  %v399_v6 = vld [vmem:[%s4837_s16 + $0x18] sm:$0xff] }
 0x49c   : > { %v2277_v33 = vmax.f32 %v2245_v53, 0.0 }
 0x49d   : > { %v2249_v18 = vadd.f32 %v4871_v20, %v2182_v16 }
 0x49e   : > { %v3508_v55 = vpop.f32.mrf.mxu0 }
 0x49f   : > { %v2217_v3 = vadd.f32 %v3508_v55, %v3452_v51  ;;  %v2272_v51 = vmax.f32 %v2240_v11, 0.0  ;;  %v2192_v55 = vadd.f32 %v2191_v31, %v1870_v48  ;;  %v2236_v11 = vadd.f32 %v4871_v20, %v2117_v49  ;;  %v5226_v49 = vld [vmem:[#allocation11_spill] sm:$0xff] }
 0x4a0   : > { %v2211_v21 = vpop.f32.mrf.mxu0  ;;  %v2270_v48 = vmax.f32 %v2238_v17, 0.0  ;;  %v2281_v8 = vmax.f32 %v2249_v18, 0.0  ;;  %v2280_v31 = vmax.f32 %v2248_v60, 0.0  ;;  %v2147_v56 = vadd.f32 %v5227_v23, %v5226_v49  ;;  %v403_v60 = vld [vmem:[%s4837_s16 + $0x38] sm:$0xff] }
 0x4a1   : > { %v2256_v57 = vadd.f32 %v4871_v20, %v2217_v3  ;;  %v2212_v19 = vadd.f32 %v2211_v21, %v1890_v52  ;;  %v2187_v52 = vadd.f32 %v3499_v28, %v4829_v45  ;;  %v2251_v25 = vadd.f32 %v4871_v20, %v2192_v55  ;;  %v5228_v55 = vld [vmem:[#allocation8_spill] sm:$0xff] }
 0x4a2   : > { %v2235_v45 = vadd.f32 %v4871_v20, %v2112_v36  ;;  %v2268_v4 = vmax.f32 %v2236_v11, 0.0  ;;  %v2172_v21 = vadd.f32 %v2171_v27, %v4827_v44  ;;  %v2087_v44 = vadd.f32 %v4848_v58, %v4795_v24  ;;  %v5232_v11 = vld [vmem:[#allocation9_spill] sm:$0xff] }
 0x4a3   : > { %v2288_v38 = vmax.f32 %v2256_v57, 0.0  ;;  %v2255_v30 = vadd.f32 %v4871_v20, %v2212_v19  ;;  %v2252_v19 = vadd.f32 %v4871_v20, %v2197_v42  ;;  %v2286_v57 = vmax.f32 %v2254_v37, 0.0 }
 0x4a4   : > { %v2250_v7 = vadd.f32 %v4871_v20, %v2187_v52  ;;  %v2283_v26 = vmax.f32 %v2251_v25, 0.0  ;;  %v2232_v27 = vadd.f32 %v4871_v20, %v2097_v35  ;;  %v2266_v28 = vmax.f32 %v2234_v46, 0.0  ;;  %v5231_v52 = vld [vmem:[#allocation18_spill] sm:$0xff] }
 0x4a5   : > { %v2287_v3 = vmax.f32 %v2255_v30, 0.0  ;;  %3229 = vmatprep.subr.mxu1 %v2288_v38  ;;  %v2285_v30 = vmax.f32 %v2253_v50, 0.0  ;;  %v2284_v62 = vmax.f32 %v2252_v19, 0.0  ;;  %v2267_v38 = vmax.f32 %v2235_v45, 0.0  ;;  %v5229_v50 = vld [vmem:[#allocation14_spill] sm:$0xff] }
 0x4a6   : > { %3230 = vmatpush3.msra.mxu1 %v2272_v51  ;;  %v2282_v41 = vmax.f32 %v2250_v7, 0.0  ;;  %v2247_v61 = vadd.f32 %v4871_v20, %v2172_v21  ;;  %v2157_v24 = vadd.f32 %v4860_v40, %v4817_v29  ;;  %v2246_v58 = vadd.f32 %v4871_v20, %v2167_v14  ;;  %v5225_v29 = vld [vmem:[#allocation16_spill] sm:$0xff]  ;;  %v400_v14 = vld [vmem:[%s4837_s16 + $0x20] sm:$0xff] }
 0x4a7   : > { %3231 = vmatprep.subr.mxu1 %v2287_v3  ;;  %v2230_v9 = vadd.f32 %v4871_v20, %v2087_v44  ;;  %v2264_v10 = vmax.f32 %v2232_v27, 0.0  ;;  %v2072_v40 = vadd.f32 %v5225_v29, %v5224_v15  ;;  %v2229_v42 = vadd.f32 %v4871_v20, %v2082_v32  ;;  %v2377_v44 = vld [vmem:[%s5073_s4 + $0x78] sm:$0xff]  ;;  %v2376_v27 = vld [vmem:[%s5073_s4 + $0x70] sm:$0xff] }
 0x4a8   : > { %3232 = vmatpush3.msra.mxu1 %v2271_v47  ;;  %v2279_v12 = vmax.f32 %v2247_v61, 0.0  ;;  %v2263_v37 = vmax.f32 %v2231_v5, 0.0  ;;  %v2244_v17 = vadd.f32 %v4871_v20, %v2157_v24  ;;  %v2278_v51 = vmax.f32 %v2246_v58, 0.0  ;;  %v5230_v47 = vld [vmem:[#allocation12_spill] sm:$0xff] }
 0x4a9   : > { %3233 = vmatprep.subr.mxu1 %v2286_v57  ;;  %v2067_v3 = vadd.f32 %v5229_v50, %v5228_v55  ;;  %v2228_v36 = vadd.f32 %v4871_v20, %v2077_v1  ;;  %v2262_v34 = vmax.f32 %v2230_v9, 0.0  ;;  %v2142_v19 = vadd.f32 %v5231_v52, %v5230_v47  ;;  %v2560_v50 = vld [vmem:[%s5073_s4 + $0xa0] sm:$0xff] }
 0x4aa   : > { %3234 = vmatpush3.msra.mxu1 %v2270_v48  ;;  %v2243_v57 = vadd.f32 %v4871_v20, %v2152_v59  ;;  %v5233_v48 = vld [vmem:[#allocation15_spill] sm:$0xff]  ;;  %v2227_v25 = vadd.f32 %v4871_v20, %v2072_v40  ;;  %v2242_v54 = vadd.f32 %v4871_v20, %v2147_v56  ;;  %v2276_v45 = vmax.f32 %v2244_v17, 0.0 }
 0x4ab   : > { %3235 = vmatprep.subr.mxu1 %v2285_v30  ;;  %v2062_v16 = vadd.f32 %v5233_v48, %v5232_v11  ;;  %v2261_v30 = vmax.f32 %v2229_v42, 0.0  ;;  %v2260_v22 = vmax.f32 %v2228_v36, 0.0  ;;  %v2241_v7 = vadd.f32 %v4871_v20, %v2142_v19  ;;  %v2558_v36 = vld [vmem:[%s5073_s4 + $0x90] sm:$0xff]  ;;  %v2641_v19 = vld [vmem:[%s5073_s4 + $0xb8] sm:$0xff] }
 0x4ac   : > { %3236 = vmatpush3.msra.mxu1 %v2269_v2  ;;  %v2226_v2 = vadd.f32 %v4871_v20, %v2067_v3  ;;  %v2259_v46 = vmax.f32 %v2227_v25, 0.0  ;;  %v5234_v61 = vmov 0.0   ;;  %v2559_v3 = vld [vmem:[%s5073_s4 + $0x98] sm:$0xff] }
 0x4ad   : > { %3237 = vmatprep.subr.mxu1 %v2284_v62  ;;  %v2275_v62 = vmax.f32 %v2243_v57, 0.0  ;;  %v2225_v35 = vadd.f32 %v4871_v20, %v2062_v16  ;;  %v2273_v18 = vmax.f32 %v2241_v7, 0.0  ;;  %v398_v20 = vld [vmem:[%s4837_s16 + $0x10] sm:$0xff] }
 0x4ae   : > { %3238 = vmatpush3.msra.mxu1 %v2268_v4  ;;  %v2274_v4 = vmax.f32 %v2242_v54, 0.0  ;;  %v2258_v21 = vmax.f32 %v2226_v2, 0.0  ;;  %v2640_v57 = vld [vmem:[%s5073_s4 + $0xb0] sm:$0xff]  ;;  %v2722_v54 = vld [vmem:[%s5073_s4 + $0xc8] sm:$0xff] }
 0x4af   : > { %3239 = vmatprep.subr.mxu1 %v2283_v26  ;;  %v2257_v26 = vmax.f32 %v2225_v35, 0.0  ;;  %v3727_v35 = vmov 0  }
 0x4b0   : > { %3240 = vmatpush3.msra.mxu1 %v2267_v38  ;;  %v401_v38 = vld [vmem:[%s4837_s16 + $0x28] sm:$0xff]  ;;  %3610 = vset.pattern.permute.xlu0 %v3727_v35 }
 0x4b1   : > { %3241 = vmatprep.subr.mxu1 %v2282_v41  ;;  %v402_v41 = vld [vmem:[%s4837_s16 + $0x30] sm:$0xff] }
 0x4b2   : > { %3242 = vmatpush3.msra.mxu1 %v2266_v28  ;;  %v2375_v28 = vld [vmem:[%s5073_s4 + $0x68] sm:$0xff] }
 0x4b3   : > { %3243 = vmatprep.subr.mxu1 %v2281_v8 }
 0x4b4   : > { %3244 = vmatpush3.msra.mxu1 %v2265_v63 }
 0x4b5   : > { %3245 = vmatprep.subr.mxu1 %v2280_v31 }
 0x4b6   : > { %3246 = vmatpush3.msra.mxu1 %v2264_v10 }
 0x4b7   : > { %3247 = vmatprep.subr.mxu1 %v2279_v12  ;;  %v3072_v12 = vld [vmem:[%s5073_s4 + $0x80] ss:$0 sm:$0xff] }
 0x4b8   : > { %3248 = vmatpush3.msra.mxu1 %v2263_v37 }
 0x4b9   : > { %3249 = vmatprep.subr.mxu1 %v2278_v51  ;;  %v404_v51 = vld [vmem:[%s299_s29] sm:$0xff]  ;;  %s2809_s29 = scalar_lea.sflag [#allocation4], %s3856_s23 }
 0x4ba   : > { %3250 = vmatpush3.msra.mxu1 %v2262_v34  ;;  %v2557_v34 = vld [vmem:[%s5073_s4 + $0x88] sm:$0xff] }
 0x4bb   : > { %3251 = vmatprep.subr.mxu1 %v2277_v33  ;;  %v3078_v33 = vld [vmem:[%s5073_s4 + $0xa8] ss:$0 sm:$0xff] }
 0x4bc   : > { %3252 = vmatpush3.msra.mxu1 %v2261_v30  ;;  %v2723_v30 = vld [vmem:[%s5073_s4 + $0xd0] sm:$0xff] }
 0x4bd   : > { %3253 = vmatprep.subr.mxu1 %v2276_v45  ;;  %v3080_v45 = vld [vmem:[%s5073_s4 + $0xc0] ss:$0 sm:$0xff] }
 0x4be   : > { %3254 = vmatpush3.msra.mxu1 %v2260_v22 }
 0x4bf   : > { %3255 = vmatprep.subr.mxu1 %v2275_v62 }
 0x4c0   : > { %3256 = vmatpush3.msra.mxu1 %v2259_v46  ;;  %v3082_v46 = vld [vmem:[%s5073_s4 + $0xd8] ss:$0 sm:$0xff] }
 0x4c1   : > { %3257 = vmatprep.subr.mxu1 %v2274_v4 }
 0x4c2   : > { %3258 = vmatpush3.msra.mxu1 %v2258_v21 }
 0x4c3   : > { %3259 = vmatprep.subr.mxu1 %v2273_v18 }
 0x4c4   : > { %3260 = vmatpush3.msra.mxu1 %v2257_v26 }
 0x4c5   : > { %2354 = vmatmul.mubr.f32.vlgmr.msra.gmra.mxu1 %v396_v0  ;;  %3509 = vmatprep.subr.mxu1 %v2377_v44 }
 0x4c6   : > { %2358 = vmatprep.mubr.f32.mxu1 %v399_v6  ;;  %3510 = vmatpush3.msra.mxu1 %v2377_v44 }
 0x4c7   : > { %3511 = vmatprep.subr.mxu1 %v2376_v27 }
 0x4c8   : > { %3512 = vmatpush3.msra.mxu1 %v2376_v27 }
 0x4c9   : > { %2359 = vmatmul.mubr.f32.gmra.mxu1 %v398_v20  ;;  %3513 = vmatprep.subr.mxu1 %v2375_v28 }
 0x4ca   : > { %2363 = vmatprep.mubr.f32.mxu1 %v401_v38  ;;  %3514 = vmatpush3.msra.mxu1 %v2375_v28 }
 0x4cb   : > { %3515 = vmatprep.subr.mxu1 %v2374_v43 }
 0x4cc   : > { %3516 = vmatpush3.msra.mxu1 %v2374_v43 }
 0x4cd   : > { %2364 = vmatmul.mubr.f32.gmra.mxu1 %v400_v14  ;;  %3523 = vmatprep.subr.mxu1 %v5234_v61 }
 0x4ce   : > { %2368 = vmatprep.mubr.f32.mxu1 %v403_v60 }
 0x4d1   : > { %2369 = vmatmul.mubr.f32.gmra.mxu1 %v402_v41 }
 0x585   : > { %v3261_v8 = vpop.f32.mrf.mxu1 }
 0x587   : > { %v3262_v32 = vpop.f32.mrf.mxu1 }
 0x588   : > { %v3263_v5 = vadd.f32 %v3262_v32, %v3261_v8 }
 0x589   : > { %v3264_v63 = vpop.f32.mrf.mxu1 }
 0x58a   : > { %3517 = vmatprep.mubr.msk.f32.mxu1 %vm1577_vm1, %v3263_v5 }
 0x58b   : > { %v3265_v24 = vpop.f32.mrf.mxu1 }
 0x58c   : > { %v3266_v58 = vadd.f32 %v3265_v24, %v3264_v63 }
 0x58d   : > { %v3267_v31 = vpop.f32.mrf.mxu1 }
 0x58e   : > { %3518 = vmatmul.mubr.msk.f32.vlgmr.msra.gmra.mxu1 %vm1577_vm1, %v3266_v58 }
 0x58f   : > { %v3268_v1 = vpop.f32.mrf.mxu1 }
 0x590   : > { %v3269_v9 = vadd.f32 %v3268_v1, %v3267_v31 }
 0x591   : > { %v3270_v10 = vpop.f32.mrf.mxu1 }
 0x592   : > { %3520 = vmatprep.mubr.msk.f32.mxu1 %vm1577_vm1, %v3269_v9 }
 0x593   : > { %v3271_v39 = vpop.f32.mrf.mxu1 }
 0x594   : > { %v3272_v13 = vadd.f32 %v3271_v39, %v3270_v10 }
 0x596   : > { %3521 = vmatmul.mubr.msk.f32.gmra.mxu1 %vm1577_vm1, %v3272_v13 }
 0x597   : > { %3531 = vmatprep.mubr.msk.f32.mxu1 %vm3726_vm2, %v5234_v61 }
 0x64e   : > { %v3519_v59 = vpop.f32.mrf.mxu1 }
 0x64f   : > { %v2467_v42 = vadd.f32 %v3519_v59, %v3072_v12 }
 0x650   : > { %v2461_v53 = vpop.f32.mrf.mxu1 }
 0x651   : > { %v2462_v49 = vadd.f32 %v3072_v12, %v2461_v53 }
 0x656   : > { %v3522_v15 = vpop.f32.mrf.mxu1 }
 0x657   : > { %v2477_v29 = vadd.f32 %v3522_v15, %v3072_v12 }
 0x658   : > { %v2471_v40 = vpop.f32.mrf.mxu1 }
 0x659   : > { %3611 = vtanh.f32 %v2477_v29  ;;  %v2472_v37 = vadd.f32 %v3072_v12, %v2471_v40 }
 0x65b   : > { %3613 = vtanh.f32 %v2472_v37 }
 0x65c   : > { %3615 = vtanh.f32 %v2467_v42 }
 0x65d   : > { %3617 = vtanh.f32 %v2462_v49 }
 0x666   : > { %v3612_v23 = vpop.eup %3611 }
 0x667   : > { %3524 = vmatpush3.msra.mxu1 %v3612_v23 }
 0x668   : > { %v3614_v56 = vpop.eup %3613  ;;  %3525 = vmatprep.subr.mxu1 %v5234_v61 }
 0x669   : > { %3526 = vmatpush3.msra.mxu1 %v3614_v56  ;;  %v3616_v17 = vpop.eup %3615 }
 0x66a   : > { %3527 = vmatprep.subr.mxu1 %v5234_v61  ;;  %v3618_v55 = vpop.eup %3617 }
 0x66b   : > { %3528 = vmatpush3.msra.mxu1 %v3616_v17 }
 0x66c   : > { %3529 = vmatprep.subr.mxu1 %v5234_v61 }
 0x66d   : > { %3530 = vmatpush3.msra.mxu1 %v3618_v55 }
 0x66e   : > { %3532 = vmatmul.mubr.msk.f32.vlgmr.msra.gmra.mxu1 %vm1577_vm1, %v404_v51  ;;  %3534 = vmatprep.subr.mxu1 %v5234_v61 }
 0x66f   : > { %3535 = vmatpush3.msra.mxu1 %v2560_v50  ;;  %3542 = vmatprep.mubr.msk.f32.mxu1 %vm3726_vm2, %v5234_v61 }
 0x670   : > { %3536 = vmatprep.subr.mxu1 %v5234_v61 }
 0x671   : > { %3537 = vmatpush3.msra.mxu1 %v2559_v3 }
 0x672   : > { %3538 = vmatprep.subr.mxu1 %v5234_v61 }
 0x673   : > { %3539 = vmatpush3.msra.mxu1 %v2558_v36 }
 0x674   : > { %3540 = vmatprep.subr.mxu1 %v5234_v61 }
 0x675   : > { %3541 = vmatpush3.msra.mxu1 %v2557_v34 }
 0x676   : > { %3545 = vmatprep.subr.mxu1 %v5234_v61 }
 0x72e   : > { %v2553_v47 = vpop.f32.mrf.mxu1 }
 0x72f   : > { %3543 = vmatmul.mubr.msk.f32.vlgmr.msra.gmra.mxu1 %vm1577_vm1, %v2553_v47 }
 0x730   : > { %v3533_v52 = vpop.f32.mrf.mxu1  ;;  %3549 = vmatprep.mubr.msk.f32.mxu1 %vm3726_vm2, %v5234_v61  ;;  %3546 = vmatpush3.msra.mxu1 %v2641_v19 }
 0x731   : > { %3547 = vmatprep.subr.mxu1 %v5234_v61 }
 0x732   : > { %3548 = vmatpush3.msra.mxu1 %v2640_v57 }
 0x733   : > { %3552 = vmatprep.subr.mxu1 %v5234_v61 }
 0x7ef   : > { %v2635_v11 = vpop.f32.mrf.mxu1 }
 0x7f0   : > { %v2636_v48 = vadd.f32 %v3078_v33, %v2635_v11 }
 0x7f1   : > { %v3544_v16 = vpop.f32.mrf.mxu1 }
 0x7f2   : > { %v2639_v25 = vmax.f32 %v2636_v48, 0.0 }
 0x7f4   : > { %3550 = vmatmul.mubr.msk.f32.vlgmr.msra.gmra.mxu1 %vm2647_vm3, %v2639_v25 }
 0x7f5   : > { %3556 = vmatprep.mubr.msk.f32.mxu1 %vm3726_vm2, %v5234_v61  ;;  %3553 = vmatpush3.msra.mxu1 %v2723_v30 }
 0x7f6   : > { %3554 = vmatprep.subr.mxu1 %v5234_v61 }
 0x7f7   : > { %3555 = vmatpush3.msra.mxu1 %v2722_v54 }
 0x8b4   : > { %v2717_v2 = vpop.f32.mrf.mxu1 }
 0x8b5   : > { %v2718_v22 = vadd.f32 %v3080_v45, %v2717_v2 }
 0x8b6   : > { %v3551_v7 = vpop.f32.mrf.mxu1 }
 0x8b7   : > { %v2721_v62 = vmax.f32 %v2718_v22, 0.0 }
 0x8b9   : > { %3557 = vmatmul.mubr.msk.f32.vlgmr.msra.gmra.mxu1 %vm2647_vm3, %v2721_v62 }
 0x979   : > { %v2798_v4 = vpop.f32.mrf.mxu1 }
 0x97a   : > { %v2799_v21 = vadd.f32 %v3082_v46, %v2798_v4 }
 0x97b   : > { %v3558_v18 = vpop.f32.mrf.mxu1 }
 0x97c   : > { %2804 = vperm.xlu0 %3610, %v2799_v21  }
 0x9f7   : > { %v2805_v26 = vpop.permute.xlu0 %2804 }
 0x9f8   : > { %2807 = vst [vmem:[%s285_s25] sm:$0xff] %v2805_v26 }
 0x9f9   : > { %3669 = shalt.err (!%p3666_p0)
}
 0x9fa   : > { %s3670_s9 = scalar_lea.hbm %s2820_s8, 128  ;;  %s3674_s11 = scalar_lea.hbm %s5074_s5, 256 }
 0x9fb   : > { %p3671_p2 = scmp.ne.s32.totalorder %s2820_s8, %s3670_s9  ;;  %p3675_p3 = scmp.lt.s32.totalorder %s2820_s8, %s5074_s5 }
 0x9fc   : > { %p3676_p6 = scmp.lt.s32.totalorder %s3674_s11, %s3670_s9 }
 0x9fd   : > { %p3672_p9 = pnand %p3671_p2, %p5235_p13 }
 0x9fe   : > { %p3677_p11 = por %p3676_p6, %p3675_p3 }
 0x9ff   : > { %p3673_p1 = pneg %p3672_p9 }
 0xa01   : > { %p3678_p12 = pnand %p3677_p11, %p3673_p1 }
 0xa03   : > { %3681 = shalt.err (!%p3678_p12)
}
 0xa04   : > { %3561 = dma.vmem_to_hbm [thread:$0]  (%p5235_p13), %s5029_s26, 128, %s2820_s8, %s2809_s29  }
 0xa05 PF: > { %s2834_s25 = sand.u32 1, %s3708_s18   ;;  %p5236_p4 = scmp.ne.s32.totalorder %s5127_s6, 0 }
 0xa06   : > { %p5237_p5 = scmp.ge.s32.totalorder %s3720_s21, 2  ;;  %s2835_s14 = scalar_lea.sflag [#allocation4], %s2834_s25 }
 0xa08   : > { %p3568_p7 = pnand %p5237_p5, %p5236_p4 }
 0xa0a   : > { %p3569_p8 = pneg %p3568_p7 }
 0xa0c   : > { %3703 = dma.done.wait (%p3569_p8), %s2835_s14, 128  }
 0xa0d   : > { %3705 = vsyncadd (%p3569_p8), %s2835_s14, 4294967168  ;;  %p18_p10 = scmp.ge.s32.totalorder %s3784_s24, 4   ;;  %s5238_s18 = smov %s3712_s19 }
 0xa0e   : > { %s5239_s19 = smov %s3716_s20  ;;  %s5240_s20 = smov %s3796_s27 }
 0xa0f   : > { %s5241_s21 = smov %s3784_s24  ;;  %20 = sbr.rel (!%p18_p10) target bundleno = 5 (0x5), region = 94 }
 0xa14   :  { %2840 = vsyncpa [#allocation3], 1 }
 0xa15   :  { %2842 = vsyncpa [#allocation3 + $0x1], 1 }
 0xa16   :  { %2843 = vsyncpa [#allocation4], 1 }
 0xa17   :  { %2845 = vsyncpa [#allocation4 + $0x1], 1 }

</bundles_post_ra>
